<compile_context>
chip_gen: v7x
topology: tpu7x:2x2x1
jax: 0.10.0
libtpu: 0.0.40
codegen_flags: <defaults>
</compile_context>

<pallas_src>
import functools

import jax
import jax.numpy as jnp
from jax import lax
from jax.experimental import pallas as pl
from jax.experimental.pallas import tpu as pltpu
import numpy as np

_LANES = 128


def _round_up(v, m):
    return (v + m - 1) // m * m


# -----------------------------------------------------------------------------
# One-time parameter packing (do NOT call per forward step).
# -----------------------------------------------------------------------------
def pack_params(params, *, matmul_dtype=jnp.bfloat16):
    """Pack every Actor weight/bias into two lane-aligned slabs.

    w_slab (matmul_dtype): every matmul RHS, pre-transposed, gate-permuted to
      [i|f|o|g], zero-padded to a common lane width Wl (padded rows/cols
      contribute exact zeros, so the kernel never column-slices a weight).
    b_slab (float32): one bias per 8-row (sublane aligned) block.
    """
    H = int(params["w_hh"].shape[1])
    n_s = int(params["w_ih"].shape[1])
    n_a = int(params["out_w"].shape[0])
    assert n_s == H and H % 8 == 0, "state/hidden size must be sublane aligned"
    G = 4 * H
    f1 = int(params["fc1_w"].shape[0])          # 32
    f2 = int(params["fc2_w"].shape[0])          # 64
    Wl = _round_up(max(G, f1, f2, n_a), _LANES)  # common lane width (128 here)

    def permute_gates(a):   # last axis 4H: PyTorch [i|f|g|o] -> [i|f|o|g]
        return jnp.concatenate(
            [a[..., :2 * H], a[..., 3 * H:4 * H], a[..., 2 * H:3 * H]], axis=-1)

    def pad(a, rows, cols=Wl):
        r, c = a.shape
        return jnp.pad(a.astype(jnp.float32), ((0, rows - r), (0, cols - c)))

    # weight slab row layout (offsets are re-derived statically in the kernel):
    #   [0      , H)       w_ih^T   (n_s, 4H)
    #   [H      , 2H)      w_hh^T   (H,   4H)
    #   [2H     , 3H)      fc1_w^T  (n_s, 32)
    #   [3H     , 3H+Wl)   fc2_w^T  (32,  64)  zero-padded to (Wl, Wl)
    #   [3H+Wl  , 3H+2Wl)  out_w^T  (64, n_a)  zero-padded to (Wl, Wl)
    w_slab = jnp.concatenate([
        pad(permute_gates(params["w_ih"].T), H),
        pad(permute_gates(params["w_hh"].T), H),
        pad(params["fc1_w"].T, H),
        pad(params["fc2_w"].T, Wl),
        pad(params["out_w"].T, Wl),
    ], axis=0).astype(matmul_dtype)

    def bias_block(b):                       # each bias gets its own 8-row block
        return pad(b.reshape(1, -1), 8)

    b_slab = jnp.concatenate([
        bias_block(permute_gates(params["b_ih"] + params["b_hh"])),  # row 0
        bias_block(params["fc1_b"]),                                 # row 8
        bias_block(params["fc2_b"]),                                 # row 16
        bias_block(params["out_b"]),                                 # row 24
    ], axis=0)                                                        # f32

    meta = {"hidden": H, "n_a": n_a}
    return w_slab, b_slab, meta


# -----------------------------------------------------------------------------
# Kernel: one batch tile of the full Actor forward pass.
# -----------------------------------------------------------------------------
def actor_kernel(x_ref, wslab_ref, bslab_ref, out_ref, xg_ref, *,
                 seq_len, hidden, n_act):
    """
    x_ref:     (T*bb, n_s)   matmul dtype, time-major rows (t*bb + j)
    wslab_ref: (3H+2Wl, Wl)  packed / pre-transposed / zero-padded weights
    bslab_ref: (32, Wl)      float32 biases, one per 8-row block
    out_ref:   (bb, n_a)     float32 softmax probabilities
    xg_ref:    (T*bb, Wl)    float32 scratch for the hoisted input-side gates
    """
    T, H = seq_len, hidden
    TB, n_s = x_ref.shape
    bb = TB // T
    Wl = wslab_ref.shape[1]
    mm_dtype = wslab_ref.dtype

    # Static row offsets of each section inside the packed weight slab.
    r_wih, r_whh, r_w1, r_w2, r_w3 = 0, H, 2 * H, 3 * H, 3 * H + Wl

    # ---- hoisted input-side LSTM matmul: one MXU op covers all T steps ------
    # Result goes to VMEM scratch; each step re-loads only its (bb, 4H) slice,
    # keeping vreg pressure flat regardless of B and T.
    xg_ref[...] = (
        jnp.dot(x_ref[...], wslab_ref[r_wih:r_wih + n_s, :],
                preferred_element_type=jnp.float32)
        + bslab_ref[0:1, :])

    # Recurrence RHS loaded once; stays live in vregs for all T steps.
    # TODO(synk): keep it resident in the systolic array instead
    #             (pltpu.matmul_push_rhs + matmul_acc_lhs/matmul_pop per step).
    w_hh = wslab_ref[r_whh:r_whh + H, :]                        # (H, Wl)

    h = jnp.zeros((bb, H), jnp.float32)
    c = jnp.zeros((bb, H), jnp.float32)

    # Fully unrolled serial recurrence (T is static and small).
    # TODO(synk): for large T switch to lax.fori_loop(..., unroll=k) over xg_ref.
    for t in range(T):
        xg_t = xg_ref[t * bb:(t + 1) * bb, :]                   # (bb, Wl) f32
        gates = xg_t + jnp.dot(h.astype(mm_dtype), w_hh,
                               preferred_element_type=jnp.float32)
        # Gate lanes were permuted once in pack_params to [ i | f | o | g ]:
        # one contiguous sigmoid over 3H lanes, tanh only over the trailing H.
        sig = jax.nn.sigmoid(gates[:, :3 * H])
        g_g = jnp.tanh(gates[:, 3 * H:4 * H])
        i_g = sig[:, 0 * H:1 * H]
        f_g = sig[:, 1 * H:2 * H]
        o_g = sig[:, 2 * H:3 * H]
        c = f_g * c + i_g * g_g
        h = o_g * jnp.tanh(c)

    # ---- MLP head on h_T (== h.squeeze(0) in the PyTorch module) ------------
    # Weight sections are zero-padded to Wl rows/cols, so padded entries
    # contribute exact zeros and no per-layer column slicing is needed.
    z1 = jnp.maximum(
        jnp.dot(h.astype(mm_dtype), wslab_ref[r_w1:r_w1 + n_s, :],
                preferred_element_type=jnp.float32) + bslab_ref[8:9, :], 0.0)
    z2 = jnp.maximum(
        jnp.dot(z1.astype(mm_dtype), wslab_ref[r_w2:r_w2 + Wl, :],
                preferred_element_type=jnp.float32) + bslab_ref[16:17, :], 0.0)
    logits = (jnp.dot(z2.astype(mm_dtype), wslab_ref[r_w3:r_w3 + Wl, :],
                      preferred_element_type=jnp.float32)
              + bslab_ref[24:25, :])[:, :n_act]

    # Softmax over actions (dim=1). Exact divide: the probabilities may feed a
    # sampler / log-prob, and the divide is far off the serial critical path.
    m = jnp.max(logits, axis=1, keepdims=True)
    e = jnp.exp(logits - m)
    out_ref[...] = e / jnp.sum(e, axis=1, keepdims=True)


# -----------------------------------------------------------------------------
# Wrapper
# -----------------------------------------------------------------------------
def actor_forward(x, packed, *, batch_tile=None):
    """x: (T, B, n_s) float32. Returns softmax action probabilities (B, n_a).

    `packed` comes from pack_params (call it once, not per step).
    `batch_tile` (multiple of 8, divides B) tiles the batch along a grid axis
    marked "parallel": on v7x pass e.g. B // 2 so both TensorCores get a tile;
    on v5e/v6e (1 TC) leave the default single tile to avoid re-running the
    serial recurrence per tile.
    """
    w_slab, b_slab, meta = packed
    T, B, n_s = x.shape
    H, n_a = meta["hidden"], meta["n_a"]
    Wl = w_slab.shape[1]
    assert n_s == H

    bb = B if batch_tile is None else int(batch_tile)
    assert B % bb == 0 and bb % 8 == 0, "batch tile must divide B and be a multiple of 8"
    nb = B // bb

    # Per-tile contiguous, time-major rows: x_tiles[i, t*bb + j] = x[t, i*bb + j].
    # For nb == 1 this is a pure reshape; the bf16 cast halves the x DMA bytes.
    x_tiles = (x.reshape(T, nb, bb, n_s)
                .transpose(1, 0, 2, 3)
                .reshape(nb, T * bb, n_s)
                .astype(w_slab.dtype))

    kernel = functools.partial(actor_kernel, seq_len=T, hidden=H, n_act=n_a)
    return pl.pallas_call(
        kernel,
        out_shape=jax.ShapeDtypeStruct((B, n_a), jnp.float32),
        grid_spec=pltpu.PrefetchScalarGridSpec(
            num_scalar_prefetch=0,
            grid=(nb,),
            in_specs=[
                # batch tile i, leading dim squeezed -> kernel sees (T*bb, n_s)
                pl.BlockSpec((None, T * bb, n_s), lambda i: (i, 0, 0)),
                # parameter slabs: one full-array block each, constant index
                # map -> a single DMA each, resident across all grid steps
                pl.BlockSpec(w_slab.shape, lambda i: (0, 0)),
                pl.BlockSpec(b_slab.shape, lambda i: (0, 0)),
            ],
            out_specs=pl.BlockSpec((bb, n_a), lambda i: (i, 0)),
            scratch_shapes=[pltpu.VMEM((T * bb, Wl), jnp.float32)],
        ),
        compiler_params=pltpu.CompilerParams(
            dimension_semantics=("parallel",)),   # v7x: shard tiles over both TCs
    )(x_tiles, w_slab, b_slab)


# -----------------------------------------------------------------------------
# Reference + init
# -----------------------------------------------------------------------------
def init_params(key, n_s, n_a):
    """Deterministic PyTorch-style uniform(-1/sqrt(fan_in), +1/sqrt(fan_in)) init."""
    def u(key, shape, fan):
        bound = 1.0 / np.sqrt(fan)
        return jax.random.uniform(key, shape, jnp.float32, -bound, bound)

    ks = jax.random.split(key, 10)
    H = n_s
    return {
        "w_ih":  u(ks[0], (4 * H, n_s), H),
        "w_hh":  u(ks[1], (4 * H, H), H),
        "b_ih":  u(ks[2], (4 * H,), H),
        "b_hh":  u(ks[3], (4 * H,), H),
        "fc1_w": u(ks[4], (32, n_s), n_s),
        "fc1_b": u(ks[5], (32,), n_s),
        "fc2_w": u(ks[6], (64, 32), 32),
        "fc2_b": u(ks[7], (64,), 32),
        "out_w": u(ks[8], (n_a, 64), 64),
        "out_b": u(ks[9], (n_a,), 64),
    }


def actor_forward_ref(x, params, *, matmul_dtype=jnp.bfloat16):
    """Pure-JAX reference with the same matmul-operand precision as the kernel."""
    T, B, n_s = x.shape
    H = n_s
    md = matmul_dtype
    w_ih_t = params["w_ih"].T.astype(md)
    w_hh_t = params["w_hh"].T.astype(md)
    b = (params["b_ih"] + params["b_hh"]).reshape(1, -1)

    xg = (jnp.dot(x.reshape(T * B, n_s).astype(md), w_ih_t,
                  preferred_element_type=jnp.float32) + b).reshape(T, B, 4 * H)

    def step(carry, xg_t):
        h, c = carry
        g = xg_t + jnp.dot(h.astype(md), w_hh_t, preferred_element_type=jnp.float32)
        i = jax.nn.sigmoid(g[:, :H])
        f = jax.nn.sigmoid(g[:, H:2 * H])
        gg = jnp.tanh(g[:, 2 * H:3 * H])
        o = jax.nn.sigmoid(g[:, 3 * H:])
        c = f * c + i * gg
        h = o * jnp.tanh(c)
        return (h, c), None

    (h, _), _ = lax.scan(step, (jnp.zeros((B, H), jnp.float32),
                                jnp.zeros((B, H), jnp.float32)), xg)
    z1 = jax.nn.relu(jnp.dot(h.astype(md), params["fc1_w"].T.astype(md),
                             preferred_element_type=jnp.float32) + params["fc1_b"])
    z2 = jax.nn.relu(jnp.dot(z1.astype(md), params["fc2_w"].T.astype(md),
                             preferred_element_type=jnp.float32) + params["fc2_b"])
    logits = (jnp.dot(z2.astype(md), params["out_w"].T.astype(md),
                      preferred_element_type=jnp.float32) + params["out_b"])
    return jax.nn.softmax(logits, axis=1)


if __name__ == "__main__":
    n_s, n_a = 32, 8        # state dim, action dim
    T, B = 8, 32            # seq length, batch (any multiple of 8; scale ~free to ~256)

    key = jax.random.PRNGKey(0)
    k_x, k_p = jax.random.split(key)
    x = jax.random.normal(k_x, (T, B, n_s), jnp.float32)
    params = init_params(k_p, n_s, n_a)
    packed = pack_params(params)      # one-time transposes / permute / merge / pad

    ref = jax.block_until_ready(actor_forward_ref(x, params))

    # default: single batch tile (grid=(1,)) — best on single-TC v5e/v6e
    probs = jax.block_until_ready(actor_forward(x, packed))
    np.testing.assert_allclose(np.asarray(probs), np.asarray(ref),
                               rtol=5e-3, atol=1e-4)
    np.testing.assert_allclose(np.asarray(probs).sum(axis=1), 1.0,
                               rtol=1e-5, atol=1e-5)
    assert probs.shape == (B, n_a)

    # two batch tiles -> grid=(2,), dimension_semantics=("parallel",)
    # (on v7x this shards the tiles across both TensorCores)
    probs2 = jax.block_until_ready(actor_forward(x, packed, batch_tile=16))
    np.testing.assert_allclose(np.asarray(probs2), np.asarray(ref),
                               rtol=5e-3, atol=1e-4)

    print("KERNEL_OK")
</pallas_src>

<mosaic_0001>
module attributes {stable_mosaic.version = 11 : i64} {
  func.func @actor_kernel(%arg0: i32, %arg1: memref<1x256x32xbf16, #tpu.memory_space<vmem>>, %arg2: memref<352x128xbf16, #tpu.memory_space<vmem>>, %arg3: memref<32x128xf32, #tpu.memory_space<vmem>>, %arg4: memref<32x8xf32, #tpu.memory_space<vmem>>, %arg5: memref<256x128xf32, #tpu.memory_space<vmem>>) attributes {dimension_semantics = [#tpu.dimension_semantics<parallel>], iteration_bounds = array<i64: 1>, scalar_prefetch = 0 : i64, scratch_operands = 1 : i64, tpu.core_type = #tpu.core_type<tc>, window_params = [{transform_indices = @transform_0, window_bounds = array<i64: 1, 256, 32>}, {pipeline_mode = #tpu.pipeline_mode<synchronous>, transform_indices = @transform_1, window_bounds = array<i64: 352, 128>}, {pipeline_mode = #tpu.pipeline_mode<synchronous>, transform_indices = @transform_2, window_bounds = array<i64: 32, 128>}, {transform_indices = @transform_3, window_bounds = array<i64: 32, 8>}]} {
    %c0 = arith.constant 0 : index
    %c0_0 = arith.constant 0 : index
    %c0_1 = arith.constant 0 : index
    %0 = vector.load %arg1[%c0, %c0_0, %c0_1] : memref<1x256x32xbf16, #tpu.memory_space<vmem>>, vector<1x256x32xbf16>
    %1 = vector.shape_cast %0 : vector<1x256x32xbf16> to vector<256x32xbf16>
    %c0_2 = arith.constant 0 : index
    %c0_3 = arith.constant 0 : index
    %2 = vector.load %arg2[%c0_2, %c0_3] : memref<352x128xbf16, #tpu.memory_space<vmem>>, vector<32x128xbf16>
    %cst = arith.constant dense<0.000000e+00> : vector<256x128xf32>
    %3 = tpu.matmul %1, %2, %cst {dimension_numbers = #tpu.dot_dimension_numbers<[1], [0], [0], [1], [0, 0, 1, 1], [], []>} : vector<256x32xbf16>, vector<32x128xbf16>, vector<256x128xf32> -> vector<256x128xf32>
    %c0_4 = arith.constant 0 : index
    %c0_5 = arith.constant 0 : index
    %4 = vector.load %arg3[%c0_4, %c0_5] : memref<32x128xf32, #tpu.memory_space<vmem>>, vector<1x128xf32>
    %5 = vector.broadcast %4 : vector<1x128xf32> to vector<256x128xf32>
    %6 = arith.addf %3, %5 : vector<256x128xf32>
    %c0_6 = arith.constant 0 : index
    %c0_7 = arith.constant 0 : index
    %7 = vector.load %arg5[%c0_6, %c0_7] : memref<256x128xf32, #tpu.memory_space<vmem>>, vector<256x128xf32>
    tpu.vector_store %arg5[%c0_6, %c0_7], %6 {strides = array<i32>} : memref<256x128xf32, #tpu.memory_space<vmem>>, vector<256x128xf32>,
    %c32 = arith.constant 32 : index
    %c0_8 = arith.constant 0 : index
    %8 = vector.load %arg2[%c32, %c0_8] : memref<352x128xbf16, #tpu.memory_space<vmem>>, vector<32x128xbf16>
    %cst_9 = arith.constant 0.000000e+00 : f32
    %9 = vector.broadcast %cst_9 : f32 to vector<32x32xf32>
    %cst_10 = arith.constant 0.000000e+00 : f32
    %10 = vector.broadcast %cst_10 : f32 to vector<32x32xf32>
    %c0_11 = arith.constant 0 : index
    %c0_12 = arith.constant 0 : index
    %11 = vector.load %arg5[%c0_11, %c0_12] : memref<256x128xf32, #tpu.memory_space<vmem>>, vector<32x128xf32>
    %12 = arith.truncf %9 : vector<32x32xf32> to vector<32x32xbf16>
    %cst_13 = arith.constant dense<0.000000e+00> : vector<32x128xf32>
    %13 = tpu.matmul %12, %8, %cst_13 {dimension_numbers = #tpu.dot_dimension_numbers<[1], [0], [0], [1], [0, 0, 1, 1], [], []>} : vector<32x32xbf16>, vector<32x128xbf16>, vector<32x128xf32> -> vector<32x128xf32>
    %14 = arith.addf %11, %13 : vector<32x128xf32>
    %15 = vector.extract_strided_slice %14 {offsets = [0, 0], sizes = [32, 96], strides = [1, 1]} : vector<32x128xf32> to vector<32x96xf32>
    %16 = arith.negf %15 : vector<32x96xf32>
    %17 = math.exp %16 : vector<32x96xf32>
    %cst_14 = arith.constant 1.000000e+00 : f32
    %18 = vector.broadcast %cst_14 : f32 to vector<32x96xf32>
    %19 = arith.addf %18, %17 : vector<32x96xf32>
    %20 = arith.divf %18, %19 : vector<32x96xf32>
    %21 = vector.extract_strided_slice %14 {offsets = [0, 96], sizes = [32, 32], strides = [1, 1]} : vector<32x128xf32> to vector<32x32xf32>
    %22 = math.tanh %21 : vector<32x32xf32>
    %23 = vector.extract_strided_slice %20 {offsets = [0, 0], sizes = [32, 32], strides = [1, 1]} : vector<32x96xf32> to vector<32x32xf32>
    %24 = vector.extract_strided_slice %20 {offsets = [0, 32], sizes = [32, 32], strides = [1, 1]} : vector<32x96xf32> to vector<32x32xf32>
    %25 = vector.extract_strided_slice %20 {offsets = [0, 64], sizes = [32, 32], strides = [1, 1]} : vector<32x96xf32> to vector<32x32xf32>
    %26 = arith.mulf %24, %10 : vector<32x32xf32>
    %27 = arith.mulf %23, %22 : vector<32x32xf32>
    %28 = arith.addf %26, %27 : vector<32x32xf32>
    %29 = math.tanh %28 : vector<32x32xf32>
    %30 = arith.mulf %25, %29 : vector<32x32xf32>
    %c32_15 = arith.constant 32 : index
    %c0_16 = arith.constant 0 : index
    %31 = vector.load %arg5[%c32_15, %c0_16] : memref<256x128xf32, #tpu.memory_space<vmem>>, vector<32x128xf32>
    %32 = arith.truncf %30 : vector<32x32xf32> to vector<32x32xbf16>
    %cst_17 = arith.constant dense<0.000000e+00> : vector<32x128xf32>
    %33 = tpu.matmul %32, %8, %cst_17 {dimension_numbers = #tpu.dot_dimension_numbers<[1], [0], [0], [1], [0, 0, 1, 1], [], []>} : vector<32x32xbf16>, vector<32x128xbf16>, vector<32x128xf32> -> vector<32x128xf32>
    %34 = arith.addf %31, %33 : vector<32x128xf32>
    %35 = vector.extract_strided_slice %34 {offsets = [0, 0], sizes = [32, 96], strides = [1, 1]} : vector<32x128xf32> to vector<32x96xf32>
    %36 = arith.negf %35 : vector<32x96xf32>
    %37 = math.exp %36 : vector<32x96xf32>
    %cst_18 = arith.constant 1.000000e+00 : f32
    %38 = vector.broadcast %cst_18 : f32 to vector<32x96xf32>
    %39 = arith.addf %38, %37 : vector<32x96xf32>
    %40 = arith.divf %38, %39 : vector<32x96xf32>
    %41 = vector.extract_strided_slice %34 {offsets = [0, 96], sizes = [32, 32], strides = [1, 1]} : vector<32x128xf32> to vector<32x32xf32>
    %42 = math.tanh %41 : vector<32x32xf32>
    %43 = vector.extract_strided_slice %40 {offsets = [0, 0], sizes = [32, 32], strides = [1, 1]} : vector<32x96xf32> to vector<32x32xf32>
    %44 = vector.extract_strided_slice %40 {offsets = [0, 32], sizes = [32, 32], strides = [1, 1]} : vector<32x96xf32> to vector<32x32xf32>
    %45 = vector.extract_strided_slice %40 {offsets = [0, 64], sizes = [32, 32], strides = [1, 1]} : vector<32x96xf32> to vector<32x32xf32>
    %46 = arith.mulf %44, %28 : vector<32x32xf32>
    %47 = arith.mulf %43, %42 : vector<32x32xf32>
    %48 = arith.addf %46, %47 : vector<32x32xf32>
    %49 = math.tanh %48 : vector<32x32xf32>
    %50 = arith.mulf %45, %49 : vector<32x32xf32>
    %c64 = arith.constant 64 : index
    %c0_19 = arith.constant 0 : index
    %51 = vector.load %arg5[%c64, %c0_19] : memref<256x128xf32, #tpu.memory_space<vmem>>, vector<32x128xf32>
    %52 = arith.truncf %50 : vector<32x32xf32> to vector<32x32xbf16>
    %cst_20 = arith.constant dense<0.000000e+00> : vector<32x128xf32>
    %53 = tpu.matmul %52, %8, %cst_20 {dimension_numbers = #tpu.dot_dimension_numbers<[1], [0], [0], [1], [0, 0, 1, 1], [], []>} : vector<32x32xbf16>, vector<32x128xbf16>, vector<32x128xf32> -> vector<32x128xf32>
    %54 = arith.addf %51, %53 : vector<32x128xf32>
    %55 = vector.extract_strided_slice %54 {offsets = [0, 0], sizes = [32, 96], strides = [1, 1]} : vector<32x128xf32> to vector<32x96xf32>
    %56 = arith.negf %55 : vector<32x96xf32>
    %57 = math.exp %56 : vector<32x96xf32>
    %cst_21 = arith.constant 1.000000e+00 : f32
    %58 = vector.broadcast %cst_21 : f32 to vector<32x96xf32>
    %59 = arith.addf %58, %57 : vector<32x96xf32>
    %60 = arith.divf %58, %59 : vector<32x96xf32>
    %61 = vector.extract_strided_slice %54 {offsets = [0, 96], sizes = [32, 32], strides = [1, 1]} : vector<32x128xf32> to vector<32x32xf32>
    %62 = math.tanh %61 : vector<32x32xf32>
    %63 = vector.extract_strided_slice %60 {offsets = [0, 0], sizes = [32, 32], strides = [1, 1]} : vector<32x96xf32> to vector<32x32xf32>
    %64 = vector.extract_strided_slice %60 {offsets = [0, 32], sizes = [32, 32], strides = [1, 1]} : vector<32x96xf32> to vector<32x32xf32>
    %65 = vector.extract_strided_slice %60 {offsets = [0, 64], sizes = [32, 32], strides = [1, 1]} : vector<32x96xf32> to vector<32x32xf32>
    %66 = arith.mulf %64, %48 : vector<32x32xf32>
    %67 = arith.mulf %63, %62 : vector<32x32xf32>
    %68 = arith.addf %66, %67 : vector<32x32xf32>
    %69 = math.tanh %68 : vector<32x32xf32>
    %70 = arith.mulf %65, %69 : vector<32x32xf32>
    %c96 = arith.constant 96 : index
    %c0_22 = arith.constant 0 : index
    %71 = vector.load %arg5[%c96, %c0_22] : memref<256x128xf32, #tpu.memory_space<vmem>>, vector<32x128xf32>
    %72 = arith.truncf %70 : vector<32x32xf32> to vector<32x32xbf16>
    %cst_23 = arith.constant dense<0.000000e+00> : vector<32x128xf32>
    %73 = tpu.matmul %72, %8, %cst_23 {dimension_numbers = #tpu.dot_dimension_numbers<[1], [0], [0], [1], [0, 0, 1, 1], [], []>} : vector<32x32xbf16>, vector<32x128xbf16>, vector<32x128xf32> -> vector<32x128xf32>
    %74 = arith.addf %71, %73 : vector<32x128xf32>
    %75 = vector.extract_strided_slice %74 {offsets = [0, 0], sizes = [32, 96], strides = [1, 1]} : vector<32x128xf32> to vector<32x96xf32>
    %76 = arith.negf %75 : vector<32x96xf32>
    %77 = math.exp %76 : vector<32x96xf32>
    %cst_24 = arith.constant 1.000000e+00 : f32
    %78 = vector.broadcast %cst_24 : f32 to vector<32x96xf32>
    %79 = arith.addf %78, %77 : vector<32x96xf32>
    %80 = arith.divf %78, %79 : vector<32x96xf32>
    %81 = vector.extract_strided_slice %74 {offsets = [0, 96], sizes = [32, 32], strides = [1, 1]} : vector<32x128xf32> to vector<32x32xf32>
    %82 = math.tanh %81 : vector<32x32xf32>
    %83 = vector.extract_strided_slice %80 {offsets = [0, 0], sizes = [32, 32], strides = [1, 1]} : vector<32x96xf32> to vector<32x32xf32>
    %84 = vector.extract_strided_slice %80 {offsets = [0, 32], sizes = [32, 32], strides = [1, 1]} : vector<32x96xf32> to vector<32x32xf32>
    %85 = vector.extract_strided_slice %80 {offsets = [0, 64], sizes = [32, 32], strides = [1, 1]} : vector<32x96xf32> to vector<32x32xf32>
    %86 = arith.mulf %84, %68 : vector<32x32xf32>
    %87 = arith.mulf %83, %82 : vector<32x32xf32>
    %88 = arith.addf %86, %87 : vector<32x32xf32>
    %89 = math.tanh %88 : vector<32x32xf32>
    %90 = arith.mulf %85, %89 : vector<32x32xf32>
    %c128 = arith.constant 128 : index
    %c0_25 = arith.constant 0 : index
    %91 = vector.load %arg5[%c128, %c0_25] : memref<256x128xf32, #tpu.memory_space<vmem>>, vector<32x128xf32>
    %92 = arith.truncf %90 : vector<32x32xf32> to vector<32x32xbf16>
    %cst_26 = arith.constant dense<0.000000e+00> : vector<32x128xf32>
    %93 = tpu.matmul %92, %8, %cst_26 {dimension_numbers = #tpu.dot_dimension_numbers<[1], [0], [0], [1], [0, 0, 1, 1], [], []>} : vector<32x32xbf16>, vector<32x128xbf16>, vector<32x128xf32> -> vector<32x128xf32>
    %94 = arith.addf %91, %93 : vector<32x128xf32>
    %95 = vector.extract_strided_slice %94 {offsets = [0, 0], sizes = [32, 96], strides = [1, 1]} : vector<32x128xf32> to vector<32x96xf32>
    %96 = arith.negf %95 : vector<32x96xf32>
    %97 = math.exp %96 : vector<32x96xf32>
    %cst_27 = arith.constant 1.000000e+00 : f32
    %98 = vector.broadcast %cst_27 : f32 to vector<32x96xf32>
    %99 = arith.addf %98, %97 : vector<32x96xf32>
    %100 = arith.divf %98, %99 : vector<32x96xf32>
    %101 = vector.extract_strided_slice %94 {offsets = [0, 96], sizes = [32, 32], strides = [1, 1]} : vector<32x128xf32> to vector<32x32xf32>
    %102 = math.tanh %101 : vector<32x32xf32>
    %103 = vector.extract_strided_slice %100 {offsets = [0, 0], sizes = [32, 32], strides = [1, 1]} : vector<32x96xf32> to vector<32x32xf32>
    %104 = vector.extract_strided_slice %100 {offsets = [0, 32], sizes = [32, 32], strides = [1, 1]} : vector<32x96xf32> to vector<32x32xf32>
    %105 = vector.extract_strided_slice %100 {offsets = [0, 64], sizes = [32, 32], strides = [1, 1]} : vector<32x96xf32> to vector<32x32xf32>
    %106 = arith.mulf %104, %88 : vector<32x32xf32>
    %107 = arith.mulf %103, %102 : vector<32x32xf32>
    %108 = arith.addf %106, %107 : vector<32x32xf32>
    %109 = math.tanh %108 : vector<32x32xf32>
    %110 = arith.mulf %105, %109 : vector<32x32xf32>
    %c160 = arith.constant 160 : index
    %c0_28 = arith.constant 0 : index
    %111 = vector.load %arg5[%c160, %c0_28] : memref<256x128xf32, #tpu.memory_space<vmem>>, vector<32x128xf32>
    %112 = arith.truncf %110 : vector<32x32xf32> to vector<32x32xbf16>
    %cst_29 = arith.constant dense<0.000000e+00> : vector<32x128xf32>
    %113 = tpu.matmul %112, %8, %cst_29 {dimension_numbers = #tpu.dot_dimension_numbers<[1], [0], [0], [1], [0, 0, 1, 1], [], []>} : vector<32x32xbf16>, vector<32x128xbf16>, vector<32x128xf32> -> vector<32x128xf32>
    %114 = arith.addf %111, %113 : vector<32x128xf32>
    %115 = vector.extract_strided_slice %114 {offsets = [0, 0], sizes = [32, 96], strides = [1, 1]} : vector<32x128xf32> to vector<32x96xf32>
    %116 = arith.negf %115 : vector<32x96xf32>
    %117 = math.exp %116 : vector<32x96xf32>
    %cst_30 = arith.constant 1.000000e+00 : f32
    %118 = vector.broadcast %cst_30 : f32 to vector<32x96xf32>
    %119 = arith.addf %118, %117 : vector<32x96xf32>
    %120 = arith.divf %118, %119 : vector<32x96xf32>
    %121 = vector.extract_strided_slice %114 {offsets = [0, 96], sizes = [32, 32], strides = [1, 1]} : vector<32x128xf32> to vector<32x32xf32>
    %122 = math.tanh %121 : vector<32x32xf32>
    %123 = vector.extract_strided_slice %120 {offsets = [0, 0], sizes = [32, 32], strides = [1, 1]} : vector<32x96xf32> to vector<32x32xf32>
    %124 = vector.extract_strided_slice %120 {offsets = [0, 32], sizes = [32, 32], strides = [1, 1]} : vector<32x96xf32> to vector<32x32xf32>
    %125 = vector.extract_strided_slice %120 {offsets = [0, 64], sizes = [32, 32], strides = [1, 1]} : vector<32x96xf32> to vector<32x32xf32>
    %126 = arith.mulf %124, %108 : vector<32x32xf32>
    %127 = arith.mulf %123, %122 : vector<32x32xf32>
    %128 = arith.addf %126, %127 : vector<32x32xf32>
    %129 = math.tanh %128 : vector<32x32xf32>
    %130 = arith.mulf %125, %129 : vector<32x32xf32>
    %c192 = arith.constant 192 : index
    %c0_31 = arith.constant 0 : index
    %131 = vector.load %arg5[%c192, %c0_31] : memref<256x128xf32, #tpu.memory_space<vmem>>, vector<32x128xf32>
    %132 = arith.truncf %130 : vector<32x32xf32> to vector<32x32xbf16>
    %cst_32 = arith.constant dense<0.000000e+00> : vector<32x128xf32>
    %133 = tpu.matmul %132, %8, %cst_32 {dimension_numbers = #tpu.dot_dimension_numbers<[1], [0], [0], [1], [0, 0, 1, 1], [], []>} : vector<32x32xbf16>, vector<32x128xbf16>, vector<32x128xf32> -> vector<32x128xf32>
    %134 = arith.addf %131, %133 : vector<32x128xf32>
    %135 = vector.extract_strided_slice %134 {offsets = [0, 0], sizes = [32, 96], strides = [1, 1]} : vector<32x128xf32> to vector<32x96xf32>
    %136 = arith.negf %135 : vector<32x96xf32>
    %137 = math.exp %136 : vector<32x96xf32>
    %cst_33 = arith.constant 1.000000e+00 : f32
    %138 = vector.broadcast %cst_33 : f32 to vector<32x96xf32>
    %139 = arith.addf %138, %137 : vector<32x96xf32>
    %140 = arith.divf %138, %139 : vector<32x96xf32>
    %141 = vector.extract_strided_slice %134 {offsets = [0, 96], sizes = [32, 32], strides = [1, 1]} : vector<32x128xf32> to vector<32x32xf32>
    %142 = math.tanh %141 : vector<32x32xf32>
    %143 = vector.extract_strided_slice %140 {offsets = [0, 0], sizes = [32, 32], strides = [1, 1]} : vector<32x96xf32> to vector<32x32xf32>
    %144 = vector.extract_strided_slice %140 {offsets = [0, 32], sizes = [32, 32], strides = [1, 1]} : vector<32x96xf32> to vector<32x32xf32>
    %145 = vector.extract_strided_slice %140 {offsets = [0, 64], sizes = [32, 32], strides = [1, 1]} : vector<32x96xf32> to vector<32x32xf32>
    %146 = arith.mulf %144, %128 : vector<32x32xf32>
    %147 = arith.mulf %143, %142 : vector<32x32xf32>
    %148 = arith.addf %146, %147 : vector<32x32xf32>
    %149 = math.tanh %148 : vector<32x32xf32>
    %150 = arith.mulf %145, %149 : vector<32x32xf32>
    %c224 = arith.constant 224 : index
    %c0_34 = arith.constant 0 : index
    %151 = vector.load %arg5[%c224, %c0_34] : memref<256x128xf32, #tpu.memory_space<vmem>>, vector<32x128xf32>
    %152 = arith.truncf %150 : vector<32x32xf32> to vector<32x32xbf16>
    %cst_35 = arith.constant dense<0.000000e+00> : vector<32x128xf32>
    %153 = tpu.matmul %152, %8, %cst_35 {dimension_numbers = #tpu.dot_dimension_numbers<[1], [0], [0], [1], [0, 0, 1, 1], [], []>} : vector<32x32xbf16>, vector<32x128xbf16>, vector<32x128xf32> -> vector<32x128xf32>
    %154 = arith.addf %151, %153 : vector<32x128xf32>
    %155 = vector.extract_strided_slice %154 {offsets = [0, 0], sizes = [32, 96], strides = [1, 1]} : vector<32x128xf32> to vector<32x96xf32>
    %156 = arith.negf %155 : vector<32x96xf32>
    %157 = math.exp %156 : vector<32x96xf32>
    %cst_36 = arith.constant 1.000000e+00 : f32
    %158 = vector.broadcast %cst_36 : f32 to vector<32x96xf32>
    %159 = arith.addf %158, %157 : vector<32x96xf32>
    %160 = arith.divf %158, %159 : vector<32x96xf32>
    %161 = vector.extract_strided_slice %154 {offsets = [0, 96], sizes = [32, 32], strides = [1, 1]} : vector<32x128xf32> to vector<32x32xf32>
    %162 = math.tanh %161 : vector<32x32xf32>
    %163 = vector.extract_strided_slice %160 {offsets = [0, 0], sizes = [32, 32], strides = [1, 1]} : vector<32x96xf32> to vector<32x32xf32>
    %164 = vector.extract_strided_slice %160 {offsets = [0, 32], sizes = [32, 32], strides = [1, 1]} : vector<32x96xf32> to vector<32x32xf32>
    %165 = vector.extract_strided_slice %160 {offsets = [0, 64], sizes = [32, 32], strides = [1, 1]} : vector<32x96xf32> to vector<32x32xf32>
    %166 = arith.mulf %164, %148 : vector<32x32xf32>
    %167 = arith.mulf %163, %162 : vector<32x32xf32>
    %168 = arith.addf %166, %167 : vector<32x32xf32>
    %169 = math.tanh %168 : vector<32x32xf32>
    %170 = arith.mulf %165, %169 : vector<32x32xf32>
    %171 = arith.truncf %170 : vector<32x32xf32> to vector<32x32xbf16>
    %c64_37 = arith.constant 64 : index
    %c0_38 = arith.constant 0 : index
    %172 = vector.load %arg2[%c64_37, %c0_38] : memref<352x128xbf16, #tpu.memory_space<vmem>>, vector<32x128xbf16>
    %cst_39 = arith.constant dense<0.000000e+00> : vector<32x128xf32>
    %173 = tpu.matmul %171, %172, %cst_39 {dimension_numbers = #tpu.dot_dimension_numbers<[1], [0], [0], [1], [0, 0, 1, 1], [], []>} : vector<32x32xbf16>, vector<32x128xbf16>, vector<32x128xf32> -> vector<32x128xf32>
    %c8 = arith.constant 8 : index
    %c0_40 = arith.constant 0 : index
    %174 = vector.load %arg3[%c8, %c0_40] : memref<32x128xf32, #tpu.memory_space<vmem>>, vector<1x128xf32>
    %175 = vector.broadcast %174 : vector<1x128xf32> to vector<32x128xf32>
    %176 = arith.addf %173, %175 : vector<32x128xf32>
    %cst_41 = arith.constant 0.000000e+00 : f32
    %177 = vector.broadcast %cst_41 : f32 to vector<32x128xf32>
    %178 = arith.maximumf %176, %177 : vector<32x128xf32>
    %179 = arith.truncf %178 : vector<32x128xf32> to vector<32x128xbf16>
    %c96_42 = arith.constant 96 : index
    %c0_43 = arith.constant 0 : index
    %180 = vector.load %arg2[%c96_42, %c0_43] : memref<352x128xbf16, #tpu.memory_space<vmem>>, vector<128x128xbf16>
    %cst_44 = arith.constant dense<0.000000e+00> : vector<32x128xf32>
    %181 = tpu.matmul %179, %180, %cst_44 {dimension_numbers = #tpu.dot_dimension_numbers<[1], [0], [0], [1], [0, 0, 1, 1], [], []>} : vector<32x128xbf16>, vector<128x128xbf16>, vector<32x128xf32> -> vector<32x128xf32>
    %c16 = arith.constant 16 : index
    %c0_45 = arith.constant 0 : index
    %182 = vector.load %arg3[%c16, %c0_45] : memref<32x128xf32, #tpu.memory_space<vmem>>, vector<1x128xf32>
    %183 = vector.broadcast %182 : vector<1x128xf32> to vector<32x128xf32>
    %184 = arith.addf %181, %183 : vector<32x128xf32>
    %cst_46 = arith.constant 0.000000e+00 : f32
    %185 = vector.broadcast %cst_46 : f32 to vector<32x128xf32>
    %186 = arith.maximumf %184, %185 : vector<32x128xf32>
    %187 = arith.truncf %186 : vector<32x128xf32> to vector<32x128xbf16>
    %c224_47 = arith.constant 224 : index
    %c0_48 = arith.constant 0 : index
    %188 = vector.load %arg2[%c224_47, %c0_48] : memref<352x128xbf16, #tpu.memory_space<vmem>>, vector<128x128xbf16>
    %cst_49 = arith.constant dense<0.000000e+00> : vector<32x128xf32>
    %189 = tpu.matmul %187, %188, %cst_49 {dimension_numbers = #tpu.dot_dimension_numbers<[1], [0], [0], [1], [0, 0, 1, 1], [], []>} : vector<32x128xbf16>, vector<128x128xbf16>, vector<32x128xf32> -> vector<32x128xf32>
    %c24 = arith.constant 24 : index
    %c0_50 = arith.constant 0 : index
    %190 = vector.load %arg3[%c24, %c0_50] : memref<32x128xf32, #tpu.memory_space<vmem>>, vector<1x128xf32>
    %191 = vector.broadcast %190 : vector<1x128xf32> to vector<32x128xf32>
    %192 = arith.addf %189, %191 : vector<32x128xf32>
    %193 = vector.extract_strided_slice %192 {offsets = [0, 0], sizes = [32, 8], strides = [1, 1]} : vector<32x128xf32> to vector<32x8xf32>
    %cst_51 = arith.constant dense<0xFF800000> : vector<32xf32>
    %194 = vector.multi_reduction <maximumf>, %193, %cst_51 [1] : vector<32x8xf32> to vector<32xf32>
    %195 = vector.shape_cast %194 : vector<32xf32> to vector<32x1xf32>
    %196 = vector.broadcast %195 : vector<32x1xf32> to vector<32x8xf32>
    %197 = arith.subf %193, %196 : vector<32x8xf32>
    %198 = math.exp %197 : vector<32x8xf32>
    %cst_52 = arith.constant dense<0.000000e+00> : vector<32xf32>
    %199 = vector.multi_reduction <add>, %198, %cst_52 [1] : vector<32x8xf32> to vector<32xf32>
    %200 = vector.shape_cast %199 : vector<32xf32> to vector<32x1xf32>
    %201 = vector.broadcast %200 : vector<32x1xf32> to vector<32x8xf32>
    %202 = arith.divf %198, %201 : vector<32x8xf32>
    %c0_53 = arith.constant 0 : index
    %c0_54 = arith.constant 0 : index
    %203 = vector.load %arg4[%c0_53, %c0_54] : memref<32x8xf32, #tpu.memory_space<vmem>>, vector<32x8xf32>
    tpu.vector_store %arg4[%c0_53, %c0_54], %202 {strides = array<i32>} : memref<32x8xf32, #tpu.memory_space<vmem>>, vector<32x8xf32>,
    return
  }
  func.func @transform_0(%arg0: i32) -> (i32, i32, i32) {
    %c0_i32 = arith.constant 0 : i32
    %c0_i32_0 = arith.constant 0 : i32
    %c0_i32_1 = arith.constant 0 : i32
    return %arg0, %c0_i32, %c0_i32_0 : i32, i32, i32
  }
  func.func @transform_1(%arg0: i32) -> (i32, i32) {
    %c0_i32 = arith.constant 0 : i32
    %c0_i32_0 = arith.constant 0 : i32
    %c0_i32_1 = arith.constant 0 : i32
    return %c0_i32, %c0_i32_0 : i32, i32
  }
  func.func @transform_2(%arg0: i32) -> (i32, i32) {
    %c0_i32 = arith.constant 0 : i32
    %c0_i32_0 = arith.constant 0 : i32
    %c0_i32_1 = arith.constant 0 : i32
    return %c0_i32, %c0_i32_0 : i32, i32
  }
  func.func @transform_3(%arg0: i32) -> (i32, i32) {
    %c0_i32 = arith.constant 0 : i32
    %c0_i32_0 = arith.constant 0 : i32
    return %arg0, %c0_i32 : i32, i32
  }
}

</mosaic_0001>

<bundles_post_ra>
// kernel: tpu_custom_call.1
= control target key start
LH: loop header
LB: loop body
LE: loop exit
PB: predicated region body
PF: predicated region fallthrough
CT: control target
= control target key end

     0   :  { %8 = vsyncpa [#allocation4], 0  ;;  %s2869_s12 = smov [#allocation3]   ;;  %s3327_s0 = inlined_call_operand.vmem [shape: bf16[1,256,32], index: 0, kind: input, shape index: {}]   ;;  %s3328_s1 = inlined_call_operand.hbm [shape: bf16[352,128], index: 1, kind: input, shape index: {}]   ;;  %s3329_s2 = inlined_call_operand.vmem [shape: f32[32,128], index: 2, kind: input, shape index: {}]   ;;  %s3330_s3 = inlined_call_operand.vmem [shape: f32[32,8], index: 3, kind: output, shape index: {}]  }
   0x1   :  { %s16_s13 = sshll.u32 %s2869_s12, 4  ;;  %s2845_s16 = scalar_lea.hbm %s3328_s1, 2816  ;;  %s17_s13 = int_to_ptr.vmem [resolvable:$true] %s16_s13 }
   0x2   :  { %p2846_p0 = scmp.ne.s32.totalorder %s3328_s1, %s2845_s16  ;;  %p2849_p1 = scmp.lt.u32.totalorder %s2845_s16, %s3328_s1 }
   0x4   :  { %p2851_p2 = pnand %p2849_p1, %p2846_p0 }
   0x6   :  { %2854 = shalt.err (!%p2851_p2)
}
   0x7   :  { %s2855_s21 = scalar_lea.vmem %s17_s13, 2816  ;;  %p2860_p4 = scmp.lt.s32.totalorder %s17_s13, %s17_s13 }
   0x8   :  { %p2856_p3 = scmp.ne.s32.totalorder %s17_s13, %s2855_s21  ;;  %p2861_p5 = scmp.lt.s32.totalorder %s2855_s21, %s2855_s21 }
   0xa   :  { %p2862_p6 = por %p2861_p5, %p2860_p4 }
   0xc   :  { %p2863_p7 = pnand %p2862_p6, %p2856_p3 }
   0xe   :  { %2866 = shalt.err (!%p2863_p7)
}
   0xf   :  { %s2870_s22 = smov 64   ;;  %s2871_s23 = smov 4  }
  0x10   :  { %22 = dma.hbm_to_vmem [thread:$0]  %s3328_s1, 2816, %s17_s13, [#allocation4], %s2870_s22, %s2870_s22, %s2871_s23  }
  0x11   :  { %2867 = dma.done.wait [#allocation4], 2816  }
  0x12   :  { %2868 = vsyncadd [#allocation4], 4294964480  ;;  %v2532_v0 = vld [vmem:[#allocation3] sm:$0xff]   ;;  %v2533_v1 = vld [vmem:[#allocation3 + $0x8] sm:$0xff]   ;;  %vm162_vm0 = vcmask 261120   ;;  %v2872_v14 = vmov 0  }
  0x13   :  { %2311 = vmatprep.subr.bf16.mxu0 %v2532_v0  ;;  %v2534_v2 = vld [vmem:[%s3327_s0] sm:$0xff]   ;;  %2459 = vmatprep.subr.bf16.mxu1 %v2532_v0  ;;  %v2912_v3 = vld [vmem:[#allocation3 + $0x10] sm:$0xff]   ;;  %v2535_v4 = vld [vmem:[%s3327_s0 + $0x8] sm:$0xff]   ;;  %s2873_s20 = smov 32   ;;  %vm2077_vm1 = vcmask 64512  }
  0x14   :  { %2312 = vmatpush3.bf16.msra.mxu0 %v2532_v0  ;;  %2461 = vmatpush3.bf16.msra.mxu1 %v2532_v0  ;;  %v2537_v5 = vld [vmem:[%s3327_s0 + $0x10] sm:$0xff]   ;;  %v2921_v6 = vld [vmem:[#allocation3 + $0x18] sm:$0xff]   ;;  %v2539_v8 = vld [vmem:[%s3327_s0 + $0x20] sm:$0xff]  }
  0x15   :  { %2313 = vmatprep.subr.bf16.mxu0 %v2533_v1  ;;  %2315 = vmatprep.mubr.msk.bf16.mxu0 %vm162_vm0, %v2534_v2  ;;  %v2538_v7 = vld [vmem:[%s3327_s0 + $0x18] sm:$0xff]   ;;  %v2540_v9 = vld [vmem:[%s3327_s0 + $0x28] sm:$0xff]   ;;  %v2542_v10 = vld [vmem:[%s3327_s0 + $0x30] sm:$0xff]  }
  0x16   :  { %2460 = vmatprep.subr.bf16.mxu1 %v2533_v1  ;;  %v2543_v11 = vld [vmem:[%s3327_s0 + $0x38] sm:$0xff]   ;;  %v2544_v12 = vld [vmem:[%s3327_s0 + $0x40] sm:$0xff]   ;;  %v2545_v13 = vld [vmem:[%s3327_s0 + $0x48] sm:$0xff]  }
  0x17   :  { %v2964_v15 = vld [vmem:[%s3329_s2] ss:$0 sm:$0xff] }
  0x18   :  { %2314 = vmatpush3.bf16.msra.mxu0 %v2533_v1  ;;  %2462 = vmatpush3.bf16.msra.mxu1 %v2533_v1 }
  0x19   :  { %2347 = vmatprep.subr.bf16.mxu0 %v2912_v3 }
  0x1b   :  { %2316 = vmatmul.mubr.msk.bf16.vlgmr.msra.gmra.mrb[0].mxu0 %vm162_vm0, %v2535_v4 }
  0x1c   :  { %2348 = vmatpush3.bf16.msra.mxu0 %v2912_v3  ;;  %2319 = vmatprep.mubr.msk.bf16.mxu0 %vm162_vm0, %v2537_v5 }
  0x1d   :  { %2349 = vmatprep.subr.bf16.mxu0 %v2921_v6 }
  0x20   :  { %2350 = vmatpush3.bf16.msra.mxu0 %v2921_v6 }
  0x21   :  { %2355 = vmatprep.subr.bf16.mxu0 %v2912_v3 }
  0x23   :  { %2320 = vmatmul.mubr.msk.bf16.gmra.mrb[4].mxu0 %vm162_vm0, %v2538_v7 }
  0x24   :  { %2323 = vmatprep.mubr.msk.bf16.mxu0 %vm162_vm0, %v2539_v8 }
  0x2b   :  { %2324 = vmatmul.mubr.msk.bf16.gmra.mrb[8].mxu0 %vm162_vm0, %v2540_v9 }
  0x2c   :  { %2327 = vmatprep.mubr.msk.bf16.mxu0 %vm162_vm0, %v2542_v10 }
  0x33   :  { %2328 = vmatmul.mubr.msk.bf16.gmra.mrb[12].mxu0 %vm162_vm0, %v2543_v11 }
  0x34   :  { %2331 = vmatprep.mubr.msk.bf16.mxu0 %vm162_vm0, %v2544_v12 }
  0x3b   :  { %2332 = vmatmul.mubr.msk.bf16.gmra.mrb[16].mxu0 %vm162_vm0, %v2545_v13 }
  0x3c   :  { %2351 = vmatprep.mubr.bf16.mxu0 %v2872_v14 }
  0x43   :  { %2352 = vmatmul.mubr.bf16.vlgmr.msra.gmra.mrb[0].mxu0 %v2872_v14 }
  0x44   :  { %2356 = vmatpush3.bf16.msra.mxu0 %v2912_v3 }
  0x45   :  { %2357 = vmatprep.subr.bf16.mxu0 %v2921_v6 }
  0x48   :  { %2358 = vmatpush3.bf16.msra.mxu0 %v2921_v6 }
  0x49   :  { %2363 = vmatprep.subr.bf16.mxu0 %v2912_v3 }
 0x116   :  { %v2353_v16 = vpop.f32.mrb[0].mxu0 }
 0x117   :  { %v2463_v17 = vadd.f32 %v2353_v16, %v2964_v15  ;;  %v461_v18 = vpop.f32.mrb[1].mxu0 }
 0x118   :  { %v2464_v19 = vadd.f32 %v2964_v15, %v461_v18  ;;  %v2354_v20 = vpop.f32.mrb[2].mxu0 }
 0x119   :  { %2570 = vtanh.f32 %v2463_v17  ;;  %v464_v21 = vpop.f32.mrb[3].mxu0  ;;  %v2465_v22 = vadd.f32 %v2354_v20, %v2964_v15  ;;  %v2170_v29 = vmul.f32 -1.442695, %v2463_v17 }
 0x11a   :  { %2572 = vtanh.f32 %v2464_v19  ;;  %v2466_v23 = vadd.f32 %v2964_v15, %v464_v21  ;;  %v2168_v28 = vmul.f32 -1.442695, %v2464_v19 }
 0x11b   :  { %2574 = vtanh.f32 %v2465_v22  ;;  %v2171_v31 = vmul.f32 -1.442695, %v2465_v22 }
 0x11c   :  { %2576 = vtanh.f32 %v2466_v23  ;;  %v2169_v30 = vmul.f32 -1.442695, %v2466_v23 }
 0x11d   :  { %2578 = vpow2.f32 %v2168_v28 }
 0x11e   :  { %2580 = vpow2.f32 %v2170_v29 }
 0x11f   :  { %2582 = vpow2.f32 %v2169_v30 }
 0x120   :  { %2584 = vpow2.f32 %v2171_v31 }
 0x123   :  { %v2571_v24 = vpop.eup %2570 }
 0x124   :  { %v2573_v25 = vpop.eup %2572  ;;  %520 = vrot.lane.b32.xlu1 %v2571_v24, %s2873_s20 }
 0x125   :  { %516 = vrot.lane.b32.xlu0 %v2573_v25, %s2873_s20  ;;  %v2575_v26 = vpop.eup %2574 }
 0x126   :  { %v2577_v27 = vpop.eup %2576 }
 0x127   :  { %v2579_v32 = vpop.eup %2578 }
 0x128   :  { %522 = vrot.lane.b32.xlu1 %v2575_v26, %s2873_s20  ;;  %v492_v33 = vadd.f32 1.0, %v2579_v32  ;;  %v2581_v34 = vpop.eup %2580 }
 0x129   :  { %518 = vrot.lane.b32.xlu0 %v2577_v27, %s2873_s20  ;;  %v2583_v35 = vpop.eup %2582  ;;  %v494_v36 = vadd.f32 1.0, %v2581_v34 }
 0x12a   :  { %2586 = vrcp.f32 %v492_v33  ;;  %v493_v37 = vadd.f32 1.0, %v2583_v35  ;;  %v2585_v38 = vpop.eup %2584 }
 0x12b   :  { %2588 = vrcp.f32 %v494_v36  ;;  %v495_v39 = vadd.f32 1.0, %v2585_v38 }
 0x12c   :  { %2590 = vrcp.f32 %v493_v37 }
 0x12d   :  { %2592 = vrcp.f32 %v495_v39 }
 0x134   :  { %v2587_v40 = vpop.eup %2586 }
 0x135   :  { %v2589_v44 = vpop.eup %2588  ;;  %v508_v52 = vmul.f32 0.0, %v2587_v40 }
 0x136   :  { %v2591_v46 = vpop.eup %2590  ;;  %v510_v55 = vmul.f32 0.0, %v2589_v44 }
 0x137   :  { %v2593_v50 = vpop.eup %2592  ;;  %v509_v58 = vmul.f32 0.0, %v2591_v46 }
 0x138   :  { %v511_v61 = vmul.f32 0.0, %v2593_v50 }
 0x196   :  { %v521_v43 = vpop.permute.xlu1 %520 }
 0x197   :  { %v517_v41 = vpop.permute.xlu0 %516  ;;  %v530_v45 = vmul.f32 %v2589_v44, %v521_v43 }
 0x198   :  { %v528_v42 = vmul.f32 %v2587_v40, %v517_v41 }
 0x19a   :  { %536 = vrot.lane.b32.xlu0 %v528_v42, %s2873_s20  ;;  %v523_v49 = vpop.permute.xlu1 %522 }
 0x19b   :  { %v519_v47 = vpop.permute.xlu0 %518  ;;  %v531_v51 = vmul.f32 %v2593_v50, %v523_v49 }
 0x19c   :  { %v529_v48 = vmul.f32 %v2591_v46, %v519_v47 }
 0x19e   :  { %540 = vrot.lane.b32.xlu0 %v530_v45, %s2873_s20  ;;  %538 = vrot.lane.b32.xlu1 %v529_v48, %s2873_s20 }
 0x1a2   :  { %542 = vrot.lane.b32.xlu1 %v531_v51, %s2873_s20 }
 0x20c   :  { %v537_v53 = vpop.permute.xlu0 %536 }
 0x20d   :  { %v2978_v54 = vadd.f32 %v537_v53, %v508_v52 }
 0x20f   :  { %2594 = vtanh.f32 %v2978_v54 }
 0x210   :  { %v541_v56 = vpop.permute.xlu0 %540  ;;  %v539_v59 = vpop.permute.xlu1 %538 }
 0x211   :  { %v2981_v57 = vadd.f32 %v541_v56, %v510_v55  ;;  %v2984_v60 = vadd.f32 %v539_v59, %v509_v58 }
 0x213   :  { %2596 = vtanh.f32 %v2981_v57 }
 0x214   :  { %2598 = vtanh.f32 %v2984_v60  ;;  %v543_v62 = vpop.permute.xlu1 %542 }
 0x215   :  { %v2987_v63 = vadd.f32 %v543_v62, %v511_v61 }
 0x217   :  { %2600 = vtanh.f32 %v2987_v63 }
 0x219   :  { %v2595_v0 = vpop.eup %2594 }
 0x21a   :  { %560 = vrot.lane.b32.xlu0 %v2595_v0, %s2873_s20 }
 0x21d   :  { %v2597_v1 = vpop.eup %2596 }
 0x21e   :  { %564 = vrot.lane.b32.xlu0 %v2597_v1, %s2873_s20  ;;  %v2599_v2 = vpop.eup %2598 }
 0x21f   :  { %562 = vrot.lane.b32.xlu1 %v2599_v2, %s2873_s20 }
 0x221   :  { %v2601_v4 = vpop.eup %2600 }
 0x223   :  { %566 = vrot.lane.b32.xlu1 %v2601_v4, %s2873_s20 }
 0x28c   :  { %v561_v5 = vpop.permute.xlu0 %560 }
 0x28d   :  { %v572_v8 = vmul.f32 %v2587_v40, %v561_v5 }
 0x290   :  { %v565_v10 = vpop.permute.xlu0 %564 }
 0x291   :  { %v563_v7 = vpop.permute.xlu1 %562  ;;  %v574_v13 = vmul.f32 %v2589_v44, %v565_v10 }
 0x292   :  { %v573_v9 = vmul.f32 %v2591_v46, %v563_v7 }
 0x294   :  { %v580_v11 = vpack.c.bf16 %v573_v9, %v572_v8 }
 0x295   :  { %v567_v12 = vpop.permute.xlu1 %566 }
 0x296   :  { %v575_v14 = vmul.f32 %v2593_v50, %v567_v12  ;;  %584 = vrot.lane.b32.xlu0 %v580_v11, %s2870_s22 }
 0x298   :  { %v581_v16 = vpack.c.bf16 %v575_v14, %v574_v13 }
 0x29a   :  { %586 = vrot.lane.b32.xlu1 %v581_v16, %s2870_s22 }
 0x308   :  { %v585_v17 = vpop.permute.xlu0 %584 }
 0x309   :  { %2359 = vmatprep.mubr.msk.bf16.mxu0 %vm162_vm0, %v585_v17 }
 0x30c   :  { %v587_v18 = vpop.permute.xlu1 %586 }
 0x30d   :  { %2360 = vmatmul.mubr.msk.bf16.vlgmr.msra.gmra.mrb[4].mxu0 %vm162_vm0, %v587_v18 }
 0x30e   :  { %2364 = vmatpush3.bf16.msra.mxu0 %v2912_v3 }
 0x30f   :  { %2365 = vmatprep.subr.bf16.mxu0 %v2921_v6 }
 0x312   :  { %2366 = vmatpush3.bf16.msra.mxu0 %v2921_v6 }
 0x313   :  { %2371 = vmatprep.subr.bf16.mxu0 %v2912_v3 }
 0x3e0   :  { %v2361_v19 = vpop.f32.mrb[4].mxu0 }
 0x3e1   :  { %v628_v20 = vpop.f32.mrb[5].mxu0  ;;  %v2467_v24 = vadd.f32 %v2361_v19, %v2964_v15 }
 0x3e2   :  { %v2468_v21 = vadd.f32 %v2964_v15, %v628_v20  ;;  %v2362_v22 = vpop.f32.mrb[6].mxu0 }
 0x3e3   :  { %v631_v23 = vpop.f32.mrb[7].mxu0  ;;  %v2469_v26 = vadd.f32 %v2362_v22, %v2964_v15  ;;  %v2176_v32 = vmul.f32 -1.442695, %v2467_v24 }
 0x3e4   :  { %2602 = vtanh.f32 %v2468_v21  ;;  %v2470_v25 = vadd.f32 %v2964_v15, %v631_v23  ;;  %v2174_v31 = vmul.f32 -1.442695, %v2468_v21 }
 0x3e5   :  { %2604 = vtanh.f32 %v2467_v24  ;;  %v2177_v34 = vmul.f32 -1.442695, %v2469_v26 }
 0x3e6   :  { %2606 = vtanh.f32 %v2470_v25  ;;  %v2175_v33 = vmul.f32 -1.442695, %v2470_v25 }
 0x3e7   :  { %2608 = vtanh.f32 %v2469_v26 }
 0x3e8   :  { %2610 = vpow2.f32 %v2174_v31 }
 0x3e9   :  { %2612 = vpow2.f32 %v2176_v32 }
 0x3ea   :  { %2614 = vpow2.f32 %v2175_v33 }
 0x3eb   :  { %2616 = vpow2.f32 %v2177_v34 }
 0x3ee   :  { %v2603_v27 = vpop.eup %2602 }
 0x3ef   :  { %683 = vrot.lane.b32.xlu0 %v2603_v27, %s2873_s20  ;;  %v2605_v28 = vpop.eup %2604 }
 0x3f0   :  { %v2607_v29 = vpop.eup %2606 }
 0x3f1   :  { %685 = vrot.lane.b32.xlu1 %v2607_v29, %s2873_s20  ;;  %v2609_v30 = vpop.eup %2608 }
 0x3f2   :  { %v2611_v35 = vpop.eup %2610 }
 0x3f3   :  { %687 = vrot.lane.b32.xlu0 %v2605_v28, %s2873_s20  ;;  %v659_v36 = vadd.f32 1.0, %v2611_v35  ;;  %v2613_v37 = vpop.eup %2612 }
 0x3f4   :  { %v2615_v38 = vpop.eup %2614  ;;  %v661_v39 = vadd.f32 1.0, %v2613_v37 }
 0x3f5   :  { %689 = vrot.lane.b32.xlu1 %v2609_v30, %s2873_s20  ;;  %2618 = vrcp.f32 %v659_v36  ;;  %v660_v40 = vadd.f32 1.0, %v2615_v38  ;;  %v2617_v41 = vpop.eup %2616 }
 0x3f6   :  { %2620 = vrcp.f32 %v661_v39  ;;  %v662_v42 = vadd.f32 1.0, %v2617_v41 }
 0x3f7   :  { %2622 = vrcp.f32 %v660_v40 }
 0x3f8   :  { %2624 = vrcp.f32 %v662_v42 }
 0x3ff   :  { %v2619_v43 = vpop.eup %2618 }
 0x400   :  { %v2621_v46 = vpop.eup %2620  ;;  %v675_v56 = vmul.f32 %v2619_v43, %v2978_v54 }
 0x401   :  { %v2623_v49 = vpop.eup %2622  ;;  %v677_v61 = vmul.f32 %v2621_v46, %v2981_v57 }
 0x402   :  { %v2625_v52 = vpop.eup %2624  ;;  %v676_v0 = vmul.f32 %v2623_v49, %v2984_v60 }
 0x403   :  { %v678_v54 = vmul.f32 %v2625_v52, %v2987_v63 }
 0x461   :  { %v684_v44 = vpop.permute.xlu0 %683 }
 0x462   :  { %v695_v45 = vmul.f32 %v2619_v43, %v684_v44 }
 0x463   :  { %v686_v50 = vpop.permute.xlu1 %685 }
 0x464   :  { %703 = vrot.lane.b32.xlu0 %v695_v45, %s2873_s20  ;;  %v696_v51 = vmul.f32 %v2623_v49, %v686_v50 }
 0x465   :  { %v688_v47 = vpop.permute.xlu0 %687 }
 0x466   :  { %v697_v48 = vmul.f32 %v2621_v46, %v688_v47  ;;  %705 = vrot.lane.b32.xlu1 %v696_v51, %s2873_s20 }
 0x467   :  { %v690_v53 = vpop.permute.xlu1 %689 }
 0x468   :  { %707 = vrot.lane.b32.xlu0 %v697_v48, %s2873_s20  ;;  %v698_v55 = vmul.f32 %v2625_v52, %v690_v53 }
 0x46a   :  { %709 = vrot.lane.b32.xlu1 %v698_v55, %s2873_s20 }
 0x4d6   :  { %v704_v58 = vpop.permute.xlu0 %703 }
 0x4d7   :  { %v3015_v59 = vadd.f32 %v704_v58, %v675_v56 }
 0x4d8   :  { %v706_v2 = vpop.permute.xlu1 %705 }
 0x4d9   :  { %2626 = vtanh.f32 %v3015_v59  ;;  %v3022_v4 = vadd.f32 %v706_v2, %v676_v0 }
 0x4da   :  { %v708_v62 = vpop.permute.xlu0 %707 }
 0x4db   :  { %v3020_v1 = vadd.f32 %v708_v62, %v677_v61 }
 0x4dc   :  { %v710_v5 = vpop.permute.xlu1 %709 }
 0x4dd   :  { %2628 = vtanh.f32 %v3020_v1  ;;  %v3027_v7 = vadd.f32 %v710_v5, %v678_v54 }
 0x4de   :  { %2630 = vtanh.f32 %v3022_v4 }
 0x4df   :  { %2632 = vtanh.f32 %v3027_v7 }
 0x4e3   :  { %v2627_v8 = vpop.eup %2626 }
 0x4e4   :  { %727 = vrot.lane.b32.xlu0 %v2627_v8, %s2873_s20 }
 0x4e7   :  { %v2629_v57 = vpop.eup %2628 }
 0x4e8   :  { %731 = vrot.lane.b32.xlu0 %v2629_v57, %s2873_s20  ;;  %v2631_v60 = vpop.eup %2630 }
 0x4e9   :  { %729 = vrot.lane.b32.xlu1 %v2631_v60, %s2873_s20  ;;  %v2633_v9 = vpop.eup %2632 }
 0x4ed   :  { %733 = vrot.lane.b32.xlu1 %v2633_v9, %s2873_s20 }
 0x556   :  { %v728_v10 = vpop.permute.xlu0 %727 }
 0x557   :  { %v739_v63 = vmul.f32 %v2619_v43, %v728_v10 }
 0x55a   :  { %v732_v13 = vpop.permute.xlu0 %731 }
 0x55b   :  { %v730_v11 = vpop.permute.xlu1 %729  ;;  %v741_v17 = vmul.f32 %v2621_v46, %v732_v13 }
 0x55c   :  { %v740_v12 = vmul.f32 %v2623_v49, %v730_v11 }
 0x55e   :  { %v747_v14 = vpack.c.bf16 %v740_v12, %v739_v63 }
 0x55f   :  { %v734_v16 = vpop.permute.xlu1 %733 }
 0x560   :  { %v742_v18 = vmul.f32 %v2625_v52, %v734_v16  ;;  %751 = vrot.lane.b32.xlu0 %v747_v14, %s2870_s22 }
 0x562   :  { %v748_v19 = vpack.c.bf16 %v742_v18, %v741_v17 }
 0x564   :  { %753 = vrot.lane.b32.xlu1 %v748_v19, %s2870_s22 }
 0x5d2   :  { %v752_v20 = vpop.permute.xlu0 %751 }
 0x5d3   :  { %2367 = vmatprep.mubr.msk.bf16.mxu0 %vm162_vm0, %v752_v20 }
 0x5d6   :  { %v754_v21 = vpop.permute.xlu1 %753 }
 0x5d7   :  { %2368 = vmatmul.mubr.msk.bf16.vlgmr.msra.gmra.mrb[8].mxu0 %vm162_vm0, %v754_v21 }
 0x5d8   :  { %2372 = vmatpush3.bf16.msra.mxu0 %v2912_v3 }
 0x5d9   :  { %2373 = vmatprep.subr.bf16.mxu0 %v2921_v6 }
 0x5dc   :  { %2374 = vmatpush3.bf16.msra.mxu0 %v2921_v6 }
 0x5dd   :  { %2379 = vmatprep.subr.bf16.mxu0 %v2912_v3 }
 0x6aa   :  { %v2369_v22 = vpop.f32.mrb[8].mxu0 }
 0x6ab   :  { %v795_v23 = vpop.f32.mrb[9].mxu0  ;;  %v2471_v27 = vadd.f32 %v2369_v22, %v2964_v15 }
 0x6ac   :  { %v2472_v24 = vadd.f32 %v2964_v15, %v795_v23  ;;  %v2370_v25 = vpop.f32.mrb[10].mxu0 }
 0x6ad   :  { %v798_v26 = vpop.f32.mrb[11].mxu0  ;;  %v2473_v29 = vadd.f32 %v2370_v25, %v2964_v15  ;;  %v2182_v35 = vmul.f32 -1.442695, %v2471_v27 }
 0x6ae   :  { %2634 = vtanh.f32 %v2472_v24  ;;  %v2474_v28 = vadd.f32 %v2964_v15, %v798_v26  ;;  %v2180_v34 = vmul.f32 -1.442695, %v2472_v24 }
 0x6af   :  { %2636 = vtanh.f32 %v2471_v27  ;;  %v2183_v37 = vmul.f32 -1.442695, %v2473_v29 }
 0x6b0   :  { %2638 = vtanh.f32 %v2474_v28  ;;  %v2181_v36 = vmul.f32 -1.442695, %v2474_v28 }
 0x6b1   :  { %2640 = vtanh.f32 %v2473_v29 }
 0x6b2   :  { %2642 = vpow2.f32 %v2180_v34 }
 0x6b3   :  { %2644 = vpow2.f32 %v2182_v35 }
 0x6b4   :  { %2646 = vpow2.f32 %v2181_v36 }
 0x6b5   :  { %2648 = vpow2.f32 %v2183_v37 }
 0x6b8   :  { %v2635_v30 = vpop.eup %2634 }
 0x6b9   :  { %850 = vrot.lane.b32.xlu0 %v2635_v30, %s2873_s20  ;;  %v2637_v31 = vpop.eup %2636 }
 0x6ba   :  { %v2639_v32 = vpop.eup %2638 }
 0x6bb   :  { %852 = vrot.lane.b32.xlu1 %v2639_v32, %s2873_s20  ;;  %v2641_v33 = vpop.eup %2640 }
 0x6bc   :  { %v2643_v38 = vpop.eup %2642 }
 0x6bd   :  { %854 = vrot.lane.b32.xlu0 %v2637_v31, %s2873_s20  ;;  %v826_v39 = vadd.f32 1.0, %v2643_v38  ;;  %v2645_v40 = vpop.eup %2644 }
 0x6be   :  { %v2647_v41 = vpop.eup %2646  ;;  %v828_v42 = vadd.f32 1.0, %v2645_v40 }
 0x6bf   :  { %856 = vrot.lane.b32.xlu1 %v2641_v33, %s2873_s20  ;;  %2650 = vrcp.f32 %v826_v39  ;;  %v827_v43 = vadd.f32 1.0, %v2647_v41  ;;  %v2649_v44 = vpop.eup %2648 }
 0x6c0   :  { %2652 = vrcp.f32 %v828_v42  ;;  %v829_v45 = vadd.f32 1.0, %v2649_v44 }
 0x6c1   :  { %2654 = vrcp.f32 %v827_v43 }
 0x6c2   :  { %2656 = vrcp.f32 %v829_v45 }
 0x6c9   :  { %v2651_v46 = vpop.eup %2650 }
 0x6ca   :  { %v2653_v49 = vpop.eup %2652  ;;  %v842_v62 = vmul.f32 %v2651_v46, %v3015_v59 }
 0x6cb   :  { %v2655_v52 = vpop.eup %2654  ;;  %v844_v54 = vmul.f32 %v2653_v49, %v3020_v1 }
 0x6cc   :  { %v2657_v56 = vpop.eup %2656  ;;  %v843_v8 = vmul.f32 %v2655_v52, %v3022_v4 }
 0x6cd   :  { %v845_v59 = vmul.f32 %v2657_v56, %v3027_v7 }
 0x72b   :  { %v851_v47 = vpop.permute.xlu0 %850 }
 0x72c   :  { %v862_v48 = vmul.f32 %v2651_v46, %v851_v47 }
 0x72d   :  { %v853_v53 = vpop.permute.xlu1 %852 }
 0x72e   :  { %870 = vrot.lane.b32.xlu0 %v862_v48, %s2873_s20  ;;  %v863_v55 = vmul.f32 %v2655_v52, %v853_v53 }
 0x72f   :  { %v855_v50 = vpop.permute.xlu0 %854 }
 0x730   :  { %v864_v51 = vmul.f32 %v2653_v49, %v855_v50  ;;  %872 = vrot.lane.b32.xlu1 %v863_v55, %s2873_s20 }
 0x731   :  { %v857_v58 = vpop.permute.xlu1 %856 }
 0x732   :  { %874 = vrot.lane.b32.xlu0 %v864_v51, %s2873_s20  ;;  %v865_v61 = vmul.f32 %v2657_v56, %v857_v58 }
 0x734   :  { %876 = vrot.lane.b32.xlu1 %v865_v61, %s2873_s20 }
 0x7a0   :  { %v871_v0 = vpop.permute.xlu0 %870 }
 0x7a1   :  { %v3055_v2 = vadd.f32 %v871_v0, %v842_v62 }
 0x7a2   :  { %v873_v60 = vpop.permute.xlu1 %872 }
 0x7a3   :  { %2658 = vtanh.f32 %v3055_v2  ;;  %v3062_v9 = vadd.f32 %v873_v60, %v843_v8 }
 0x7a4   :  { %v875_v5 = vpop.permute.xlu0 %874 }
 0x7a5   :  { %v3060_v57 = vadd.f32 %v875_v5, %v844_v54 }
 0x7a6   :  { %v877_v10 = vpop.permute.xlu1 %876 }
 0x7a7   :  { %2660 = vtanh.f32 %v3060_v57  ;;  %v3067_v11 = vadd.f32 %v877_v10, %v845_v59 }
 0x7a8   :  { %2662 = vtanh.f32 %v3062_v9 }
 0x7a9   :  { %2664 = vtanh.f32 %v3067_v11 }
 0x7ad   :  { %v2659_v63 = vpop.eup %2658 }
 0x7ae   :  { %894 = vrot.lane.b32.xlu0 %v2659_v63, %s2873_s20 }
 0x7b1   :  { %v2661_v1 = vpop.eup %2660 }
 0x7b2   :  { %898 = vrot.lane.b32.xlu0 %v2661_v1, %s2873_s20  ;;  %v2663_v4 = vpop.eup %2662 }
 0x7b3   :  { %896 = vrot.lane.b32.xlu1 %v2663_v4, %s2873_s20  ;;  %v2665_v12 = vpop.eup %2664 }
 0x7b7   :  { %900 = vrot.lane.b32.xlu1 %v2665_v12, %s2873_s20 }
 0x820   :  { %v895_v13 = vpop.permute.xlu0 %894 }
 0x821   :  { %v906_v7 = vmul.f32 %v2651_v46, %v895_v13 }
 0x824   :  { %v899_v17 = vpop.permute.xlu0 %898 }
 0x825   :  { %v897_v14 = vpop.permute.xlu1 %896  ;;  %v908_v20 = vmul.f32 %v2653_v49, %v899_v17 }
 0x826   :  { %v907_v16 = vmul.f32 %v2655_v52, %v897_v14 }
 0x828   :  { %v914_v18 = vpack.c.bf16 %v907_v16, %v906_v7 }
 0x829   :  { %v901_v19 = vpop.permute.xlu1 %900 }
 0x82a   :  { %v909_v21 = vmul.f32 %v2657_v56, %v901_v19  ;;  %918 = vrot.lane.b32.xlu0 %v914_v18, %s2870_s22 }
 0x82c   :  { %v915_v22 = vpack.c.bf16 %v909_v21, %v908_v20 }
 0x82e   :  { %920 = vrot.lane.b32.xlu1 %v915_v22, %s2870_s22 }
 0x89c   :  { %v919_v23 = vpop.permute.xlu0 %918 }
 0x89d   :  { %2375 = vmatprep.mubr.msk.bf16.mxu0 %vm162_vm0, %v919_v23 }
 0x8a0   :  { %v921_v24 = vpop.permute.xlu1 %920 }
 0x8a1   :  { %2376 = vmatmul.mubr.msk.bf16.vlgmr.msra.gmra.mrb[12].mxu0 %vm162_vm0, %v921_v24 }
 0x8a2   :  { %2380 = vmatpush3.bf16.msra.mxu0 %v2912_v3 }
 0x8a3   :  { %2381 = vmatprep.subr.bf16.mxu0 %v2921_v6 }
 0x8a6   :  { %2382 = vmatpush3.bf16.msra.mxu0 %v2921_v6 }
 0x8a7   :  { %2387 = vmatprep.subr.bf16.mxu0 %v2912_v3 }
 0x974   :  { %v2377_v25 = vpop.f32.mrb[12].mxu0 }
 0x975   :  { %v962_v26 = vpop.f32.mrb[13].mxu0  ;;  %v2475_v30 = vadd.f32 %v2377_v25, %v2964_v15 }
 0x976   :  { %v2476_v27 = vadd.f32 %v2964_v15, %v962_v26  ;;  %v2378_v28 = vpop.f32.mrb[14].mxu0 }
 0x977   :  { %v965_v29 = vpop.f32.mrb[15].mxu0  ;;  %v2477_v32 = vadd.f32 %v2378_v28, %v2964_v15  ;;  %v2188_v38 = vmul.f32 -1.442695, %v2475_v30 }
 0x978   :  { %2666 = vtanh.f32 %v2476_v27  ;;  %v2478_v31 = vadd.f32 %v2964_v15, %v965_v29  ;;  %v2186_v37 = vmul.f32 -1.442695, %v2476_v27 }
 0x979   :  { %2668 = vtanh.f32 %v2475_v30  ;;  %v2189_v40 = vmul.f32 -1.442695, %v2477_v32 }
 0x97a   :  { %2670 = vtanh.f32 %v2478_v31  ;;  %v2187_v39 = vmul.f32 -1.442695, %v2478_v31 }
 0x97b   :  { %2672 = vtanh.f32 %v2477_v32 }
 0x97c   :  { %2674 = vpow2.f32 %v2186_v37 }
 0x97d   :  { %2676 = vpow2.f32 %v2188_v38 }
 0x97e   :  { %2678 = vpow2.f32 %v2187_v39 }
 0x97f   :  { %2680 = vpow2.f32 %v2189_v40 }
 0x982   :  { %v2667_v33 = vpop.eup %2666 }
 0x983   :  { %1017 = vrot.lane.b32.xlu0 %v2667_v33, %s2873_s20  ;;  %v2669_v34 = vpop.eup %2668 }
 0x984   :  { %v2671_v35 = vpop.eup %2670 }
 0x985   :  { %1019 = vrot.lane.b32.xlu1 %v2671_v35, %s2873_s20  ;;  %v2673_v36 = vpop.eup %2672 }
 0x986   :  { %v2675_v41 = vpop.eup %2674 }
 0x987   :  { %1021 = vrot.lane.b32.xlu0 %v2669_v34, %s2873_s20  ;;  %v993_v42 = vadd.f32 1.0, %v2675_v41  ;;  %v2677_v43 = vpop.eup %2676 }
 0x988   :  { %v2679_v44 = vpop.eup %2678  ;;  %v995_v45 = vadd.f32 1.0, %v2677_v43 }
 0x989   :  { %1023 = vrot.lane.b32.xlu1 %v2673_v36, %s2873_s20  ;;  %2682 = vrcp.f32 %v993_v42  ;;  %v994_v46 = vadd.f32 1.0, %v2679_v44  ;;  %v2681_v47 = vpop.eup %2680 }
 0x98a   :  { %2684 = vrcp.f32 %v995_v45  ;;  %v996_v48 = vadd.f32 1.0, %v2681_v47 }
 0x98b   :  { %2686 = vrcp.f32 %v994_v46 }
 0x98c   :  { %2688 = vrcp.f32 %v996_v48 }
 0x993   :  { %v2683_v49 = vpop.eup %2682 }
 0x994   :  { %v2685_v52 = vpop.eup %2684  ;;  %v1009_v5 = vmul.f32 %v2683_v49, %v3055_v2 }
 0x995   :  { %v2687_v56 = vpop.eup %2686  ;;  %v1011_v59 = vmul.f32 %v2685_v52, %v3060_v57 }
 0x996   :  { %v2689_v62 = vpop.eup %2688  ;;  %v1010_v63 = vmul.f32 %v2687_v56, %v3062_v9 }
 0x997   :  { %v1012_v2 = vmul.f32 %v2689_v62, %v3067_v11 }
 0x9f5   :  { %v1018_v50 = vpop.permute.xlu0 %1017 }
 0x9f6   :  { %v1029_v51 = vmul.f32 %v2683_v49, %v1018_v50 }
 0x9f7   :  { %v1020_v58 = vpop.permute.xlu1 %1019 }
 0x9f8   :  { %1037 = vrot.lane.b32.xlu0 %v1029_v51, %s2873_s20  ;;  %v1030_v61 = vmul.f32 %v2687_v56, %v1020_v58 }
 0x9f9   :  { %v1022_v53 = vpop.permute.xlu0 %1021 }
 0x9fa   :  { %v1031_v55 = vmul.f32 %v2685_v52, %v1022_v53  ;;  %1039 = vrot.lane.b32.xlu1 %v1030_v61, %s2873_s20 }
 0x9fb   :  { %v1024_v0 = vpop.permute.xlu1 %1023 }
 0x9fc   :  { %1041 = vrot.lane.b32.xlu0 %v1031_v55, %s2873_s20  ;;  %v1032_v54 = vmul.f32 %v2689_v62, %v1024_v0 }
 0x9fe   :  { %1043 = vrot.lane.b32.xlu1 %v1032_v54, %s2873_s20 }
 0xa6a   :  { %v1038_v8 = vpop.permute.xlu0 %1037 }
 0xa6b   :  { %v3095_v60 = vadd.f32 %v1038_v8, %v1009_v5 }
 0xa6c   :  { %v1040_v4 = vpop.permute.xlu1 %1039 }
 0xa6d   :  { %2690 = vtanh.f32 %v3095_v60  ;;  %v3102_v12 = vadd.f32 %v1040_v4, %v1010_v63 }
 0xa6e   :  { %v1042_v10 = vpop.permute.xlu0 %1041 }
 0xa6f   :  { %v3100_v1 = vadd.f32 %v1042_v10, %v1011_v59 }
 0xa70   :  { %v1044_v13 = vpop.permute.xlu1 %1043 }
 0xa71   :  { %2692 = vtanh.f32 %v3100_v1  ;;  %v3107_v14 = vadd.f32 %v1044_v13, %v1012_v2 }
 0xa72   :  { %2694 = vtanh.f32 %v3102_v12 }
 0xa73   :  { %2696 = vtanh.f32 %v3107_v14 }
 0xa77   :  { %v2691_v7 = vpop.eup %2690 }
 0xa78   :  { %1061 = vrot.lane.b32.xlu0 %v2691_v7, %s2873_s20 }
 0xa7b   :  { %v2693_v57 = vpop.eup %2692 }
 0xa7c   :  { %1065 = vrot.lane.b32.xlu0 %v2693_v57, %s2873_s20  ;;  %v2695_v9 = vpop.eup %2694 }
 0xa7d   :  { %1063 = vrot.lane.b32.xlu1 %v2695_v9, %s2873_s20  ;;  %v2697_v16 = vpop.eup %2696 }
 0xa81   :  { %1067 = vrot.lane.b32.xlu1 %v2697_v16, %s2873_s20 }
 0xaea   :  { %v1062_v17 = vpop.permute.xlu0 %1061 }
 0xaeb   :  { %v1073_v11 = vmul.f32 %v2683_v49, %v1062_v17 }
 0xaee   :  { %v1066_v20 = vpop.permute.xlu0 %1065 }
 0xaef   :  { %v1064_v18 = vpop.permute.xlu1 %1063  ;;  %v1075_v23 = vmul.f32 %v2685_v52, %v1066_v20 }
 0xaf0   :  { %v1074_v19 = vmul.f32 %v2687_v56, %v1064_v18 }
 0xaf2   :  { %v1081_v21 = vpack.c.bf16 %v1074_v19, %v1073_v11  ;;  %v2547_v11 = vld [vmem:[%s3327_s0 + $0x58] sm:$0xff]  }
 0xaf3   :  { %v1068_v22 = vpop.permute.xlu1 %1067 }
 0xaf4   :  { %v1076_v24 = vmul.f32 %v2689_v62, %v1068_v22  ;;  %1085 = vrot.lane.b32.xlu0 %v1081_v21, %s2870_s22 }
 0xaf6   :  { %v1082_v25 = vpack.c.bf16 %v1076_v24, %v1075_v23 }
 0xaf8   :  { %1087 = vrot.lane.b32.xlu1 %v1082_v25, %s2870_s22 }
 0xb66   :  { %v1086_v26 = vpop.permute.xlu0 %1085 }
 0xb67   :  { %2383 = vmatprep.mubr.msk.bf16.mxu0 %vm162_vm0, %v1086_v26 }
 0xb6a   :  { %v1088_v27 = vpop.permute.xlu1 %1087 }
 0xb6b   :  { %2384 = vmatmul.mubr.msk.bf16.vlgmr.msra.gmra.mrb[16].mxu0 %vm162_vm0, %v1088_v27 }
 0xb6c   :  { %2388 = vmatpush3.bf16.msra.mxu0 %v2912_v3 }
 0xb6d   :  { %2389 = vmatprep.subr.bf16.mxu0 %v2921_v6 }
 0xb70   :  { %2390 = vmatpush3.bf16.msra.mxu0 %v2921_v6 }
 0xb71   :  { %2395 = vmatprep.subr.bf16.mxu0 %v2912_v3 }
 0xc3e   :  { %v2385_v28 = vpop.f32.mrb[16].mxu0 }
 0xc3f   :  { %v1129_v29 = vpop.f32.mrb[17].mxu0  ;;  %v2479_v33 = vadd.f32 %v2385_v28, %v2964_v15 }
 0xc40   :  { %v2480_v30 = vadd.f32 %v2964_v15, %v1129_v29  ;;  %v2386_v31 = vpop.f32.mrb[18].mxu0 }
 0xc41   :  { %v1132_v32 = vpop.f32.mrb[19].mxu0  ;;  %v2481_v35 = vadd.f32 %v2386_v31, %v2964_v15  ;;  %v2194_v39 = vmul.f32 -1.442695, %v2479_v33  ;;  %v3166_v31 = vld [vmem:[#allocation3 + $0x10] sm:$0xff]  }
 0xc42   :  { %2698 = vtanh.f32 %v2480_v30  ;;  %v2482_v34 = vadd.f32 %v2964_v15, %v1132_v32  ;;  %v2192_v38 = vmul.f32 -1.442695, %v2480_v30  ;;  %v3169_v32 = vld [vmem:[#allocation3 + $0x18] sm:$0xff]  }
 0xc43   :  { %2700 = vtanh.f32 %v2479_v33  ;;  %v2195_v41 = vmul.f32 -1.442695, %v2481_v35 }
 0xc44   :  { %2702 = vtanh.f32 %v2482_v34  ;;  %v2193_v40 = vmul.f32 -1.442695, %v2482_v34 }
 0xc45   :  { %2704 = vtanh.f32 %v2481_v35 }
 0xc46   :  { %2706 = vpow2.f32 %v2192_v38  ;;  %v3179_v38 = vld [vmem:[%s3329_s2] ss:$0 sm:$0xff] }
 0xc47   :  { %2708 = vpow2.f32 %v2194_v39 }
 0xc48   :  { %2710 = vpow2.f32 %v2193_v40 }
 0xc49   :  { %2712 = vpow2.f32 %v2195_v41 }
 0xc4c   :  { %v2699_v36 = vpop.eup %2698 }
 0xc4d   :  { %1184 = vrot.lane.b32.xlu0 %v2699_v36, %s2873_s20  ;;  %v2701_v3 = vpop.eup %2700 }
 0xc4e   :  { %v2703_v6 = vpop.eup %2702 }
 0xc4f   :  { %1186 = vrot.lane.b32.xlu1 %v2703_v6, %s2873_s20  ;;  %v2705_v37 = vpop.eup %2704 }
 0xc50   :  { %v2707_v42 = vpop.eup %2706 }
 0xc51   :  { %1188 = vrot.lane.b32.xlu0 %v2701_v3, %s2873_s20  ;;  %v1160_v43 = vadd.f32 1.0, %v2707_v42  ;;  %v2709_v44 = vpop.eup %2708 }
 0xc52   :  { %v2711_v45 = vpop.eup %2710  ;;  %v1162_v46 = vadd.f32 1.0, %v2709_v44 }
 0xc53   :  { %1190 = vrot.lane.b32.xlu1 %v2705_v37, %s2873_s20  ;;  %2714 = vrcp.f32 %v1160_v43  ;;  %v1161_v47 = vadd.f32 1.0, %v2711_v45  ;;  %v2713_v48 = vpop.eup %2712 }
 0xc54   :  { %2716 = vrcp.f32 %v1162_v46  ;;  %v1163_v49 = vadd.f32 1.0, %v2713_v48 }
 0xc55   :  { %2718 = vrcp.f32 %v1161_v47 }
 0xc56   :  { %2720 = vrcp.f32 %v1163_v49 }
 0xc5d   :  { %v2715_v50 = vpop.eup %2714 }
 0xc5e   :  { %v2717_v53 = vpop.eup %2716  ;;  %v1176_v8 = vmul.f32 %v2715_v50, %v3095_v60 }
 0xc5f   :  { %v2719_v58 = vpop.eup %2718  ;;  %v1178_v63 = vmul.f32 %v2717_v53, %v3100_v1  ;;  %v2546_v1 = vld [vmem:[%s3327_s0 + $0x50] sm:$0xff]  }
 0xc60   :  { %v2721_v0 = vpop.eup %2720  ;;  %v1177_v2 = vmul.f32 %v2719_v58, %v3102_v12  ;;  %2335 = vmatprep.mubr.msk.bf16.mxu1 %vm162_vm0, %v2546_v1 }
 0xc61   :  { %v1179_v60 = vmul.f32 %v2721_v0, %v3107_v14  ;;  %2336 = vmatmul.mubr.msk.bf16.vlgmr.msra.gmra.mrb[0].mxu1 %vm162_vm0, %v2547_v11 }
 0xcbf   :  { %v1185_v51 = vpop.permute.xlu0 %1184 }
 0xcc0   :  { %v1196_v52 = vmul.f32 %v2715_v50, %v1185_v51 }
 0xcc1   :  { %v1187_v61 = vpop.permute.xlu1 %1186 }
 0xcc2   :  { %1204 = vrot.lane.b32.xlu0 %v1196_v52, %s2873_s20  ;;  %v1197_v62 = vmul.f32 %v2719_v58, %v1187_v61 }
 0xcc3   :  { %v1189_v55 = vpop.permute.xlu0 %1188 }
 0xcc4   :  { %v1198_v56 = vmul.f32 %v2717_v53, %v1189_v55  ;;  %1206 = vrot.lane.b32.xlu1 %v1197_v62, %s2873_s20 }
 0xcc5   :  { %v1191_v54 = vpop.permute.xlu1 %1190 }
 0xcc6   :  { %1208 = vrot.lane.b32.xlu0 %v1198_v56, %s2873_s20  ;;  %v1199_v5 = vmul.f32 %v2721_v0, %v1191_v54 }
 0xcc8   :  { %1210 = vrot.lane.b32.xlu1 %v1199_v5, %s2873_s20 }
 0xd34   :  { %v1205_v59 = vpop.permute.xlu0 %1204  ;;  %v2337_v33 = vpop.f32.mrb[0].mxu1 }
 0xd35   :  { %v3135_v10 = vadd.f32 %v1205_v59, %v1176_v8  ;;  %v325_v34 = vpop.f32.mrb[1].mxu1  ;;  %v334_v3 = vadd.f32 %v2337_v33, %v2964_v15  ;;  %v2549_v33 = vld [vmem:[%s3327_s0 + $0x68] sm:$0xff]  }
 0xd36   :  { %v1207_v7 = vpop.permute.xlu1 %1206  ;;  %v2338_v35 = vpop.f32.mrb[2].mxu1  ;;  %v326_v6 = vadd.f32 %v2964_v15, %v325_v34 }
 0xd37   :  { %2722 = vtanh.f32 %v3135_v10  ;;  %v3142_v57 = vadd.f32 %v1207_v7, %v1177_v2  ;;  %v328_v36 = vpop.f32.mrb[3].mxu1  ;;  %v337_v39 = vadd.f32 %v3179_v38, %v2338_v35 }
 0xd38   :  { %v1209_v4 = vpop.permute.xlu0 %1208  ;;  %v329_v42 = vadd.f32 %v3179_v38, %v328_v36 }
 0xd39   :  { %v3140_v13 = vadd.f32 %v1209_v4, %v1178_v63 }
 0xd3a   :  { %v1211_v9 = vpop.permute.xlu1 %1210 }
 0xd3b   :  { %2724 = vtanh.f32 %v3140_v13  ;;  %v3147_v16 = vadd.f32 %v1211_v9, %v1179_v60 }
 0xd3c   :  { %2726 = vtanh.f32 %v3142_v57 }
 0xd3d   :  { %2728 = vtanh.f32 %v3147_v16 }
 0xd41   :  { %v2723_v17 = vpop.eup %2722 }
 0xd42   :  { %1228 = vrot.lane.b32.xlu0 %v2723_v17, %s2873_s20 }
 0xd45   :  { %v2725_v12 = vpop.eup %2724 }
 0xd46   :  { %1232 = vrot.lane.b32.xlu0 %v2725_v12, %s2873_s20  ;;  %v2727_v18 = vpop.eup %2726 }
 0xd47   :  { %1230 = vrot.lane.b32.xlu1 %v2727_v18, %s2873_s20  ;;  %v2729_v14 = vpop.eup %2728 }
 0xd4b   :  { %1234 = vrot.lane.b32.xlu1 %v2729_v14, %s2873_s20 }
 0xdb4   :  { %v1229_v19 = vpop.permute.xlu0 %1228 }
 0xdb5   :  { %v1240_v21 = vmul.f32 %v2715_v50, %v1229_v19 }
 0xdb8   :  { %v1233_v23 = vpop.permute.xlu0 %1232 }
 0xdb9   :  { %v1231_v20 = vpop.permute.xlu1 %1230  ;;  %v1242_v26 = vmul.f32 %v2717_v53, %v1233_v23 }
 0xdba   :  { %v1241_v22 = vmul.f32 %v2719_v58, %v1231_v20 }
 0xdbc   :  { %v1248_v24 = vpack.c.bf16 %v1241_v22, %v1240_v21 }
 0xdbd   :  { %v1235_v25 = vpop.permute.xlu1 %1234 }
 0xdbe   :  { %v1243_v27 = vmul.f32 %v2721_v0, %v1235_v25  ;;  %1252 = vrot.lane.b32.xlu0 %v1248_v24, %s2870_s22 }
 0xdc0   :  { %v1249_v28 = vpack.c.bf16 %v1243_v27, %v1242_v26 }
 0xdc2   :  { %1254 = vrot.lane.b32.xlu1 %v1249_v28, %s2870_s22 }
 0xe30   :  { %v1253_v29 = vpop.permute.xlu0 %1252 }
 0xe31   :  { %2391 = vmatprep.mubr.msk.bf16.mxu0 %vm162_vm0, %v1253_v29 }
 0xe34   :  { %v1255_v30 = vpop.permute.xlu1 %1254 }
 0xe35   :  { %2392 = vmatmul.mubr.msk.bf16.vlgmr.msra.gmra.mrb[20].mxu0 %vm162_vm0, %v1255_v30 }
 0xe36   :  { %2396 = vmatpush3.bf16.msra.mxu0 %v3166_v31 }
 0xe37   :  { %2397 = vmatprep.subr.bf16.mxu0 %v3169_v32 }
 0xe3a   :  { %2398 = vmatpush3.bf16.msra.mxu0 %v3169_v32 }
 0xe3b   :  { %2403 = vmatprep.subr.bf16.mxu0 %v3166_v31 }
 0xf08   :  { %v2393_v37 = vpop.f32.mrb[20].mxu0 }
 0xf09   :  { %v1313_v40 = vadd.f32 %v2393_v37, %v334_v3  ;;  %v1296_v41 = vpop.f32.mrb[21].mxu0 }
 0xf0a   :  { %v1311_v43 = vadd.f32 %v1296_v41, %v326_v6  ;;  %v2394_v44 = vpop.f32.mrb[22].mxu0 }
 0xf0b   :  { %v1314_v45 = vadd.f32 %v2394_v44, %v337_v39  ;;  %v1299_v46 = vpop.f32.mrb[23].mxu0  ;;  %v2200_v52 = vmul.f32 -1.442695, %v1313_v40 }
 0xf0c   :  { %2730 = vtanh.f32 %v1311_v43  ;;  %v1312_v47 = vadd.f32 %v1299_v46, %v329_v42  ;;  %v2198_v51 = vmul.f32 -1.442695, %v1311_v43 }
 0xf0d   :  { %2732 = vtanh.f32 %v1313_v40  ;;  %v2201_v55 = vmul.f32 -1.442695, %v1314_v45 }
 0xf0e   :  { %2734 = vtanh.f32 %v1312_v47  ;;  %v2199_v53 = vmul.f32 -1.442695, %v1312_v47 }
 0xf0f   :  { %2736 = vtanh.f32 %v1314_v45 }
 0xf10   :  { %2738 = vpow2.f32 %v2198_v51 }
 0xf11   :  { %2740 = vpow2.f32 %v2200_v52 }
 0xf12   :  { %2742 = vpow2.f32 %v2199_v53 }
 0xf13   :  { %2744 = vpow2.f32 %v2201_v55 }
 0xf16   :  { %v2731_v15 = vpop.eup %2730 }
 0xf17   :  { %1351 = vrot.lane.b32.xlu0 %v2731_v15, %s2873_s20  ;;  %v2733_v48 = vpop.eup %2732 }
 0xf18   :  { %v2735_v49 = vpop.eup %2734 }
 0xf19   :  { %1353 = vrot.lane.b32.xlu1 %v2735_v49, %s2873_s20  ;;  %v2737_v50 = vpop.eup %2736 }
 0xf1a   :  { %v2739_v56 = vpop.eup %2738 }
 0xf1b   :  { %1355 = vrot.lane.b32.xlu0 %v2733_v48, %s2873_s20  ;;  %v1327_v58 = vadd.f32 1.0, %v2739_v56  ;;  %v2741_v61 = vpop.eup %2740 }
 0xf1c   :  { %v2743_v62 = vpop.eup %2742  ;;  %v1329_v0 = vadd.f32 1.0, %v2741_v61 }
 0xf1d   :  { %1357 = vrot.lane.b32.xlu1 %v2737_v50, %s2873_s20  ;;  %2746 = vrcp.f32 %v1327_v58  ;;  %v1328_v54 = vadd.f32 1.0, %v2743_v62  ;;  %v2745_v5 = vpop.eup %2744 }
 0xf1e   :  { %2748 = vrcp.f32 %v1329_v0  ;;  %v1330_v8 = vadd.f32 1.0, %v2745_v5 }
 0xf1f   :  { %2750 = vrcp.f32 %v1328_v54 }
 0xf20   :  { %2752 = vrcp.f32 %v1330_v8 }
 0xf27   :  { %v2747_v59 = vpop.eup %2746 }
 0xf28   :  { %v2749_v2 = vpop.eup %2748  ;;  %v1343_v11 = vmul.f32 %v2747_v59, %v3135_v10 }
 0xf29   :  { %v2751_v9 = vpop.eup %2750  ;;  %v1345_v21 = vmul.f32 %v2749_v2, %v3140_v13  ;;  %v2548_v13 = vld [vmem:[%s3327_s0 + $0x60] sm:$0xff]  }
 0xf2a   :  { %v2753_v12 = vpop.eup %2752  ;;  %v1344_v23 = vmul.f32 %v2751_v9, %v3142_v57  ;;  %2339 = vmatprep.mubr.msk.bf16.mxu1 %vm162_vm0, %v2548_v13 }
 0xf2b   :  { %v1346_v10 = vmul.f32 %v2753_v12, %v3147_v16  ;;  %2340 = vmatmul.mubr.msk.bf16.gmra.mrb[4].mxu1 %vm162_vm0, %v2549_v33 }
 0xf89   :  { %v1352_v63 = vpop.permute.xlu0 %1351 }
 0xf8a   :  { %v1363_v4 = vmul.f32 %v2747_v59, %v1352_v63 }
 0xf8b   :  { %v1354_v17 = vpop.permute.xlu1 %1353 }
 0xf8c   :  { %1371 = vrot.lane.b32.xlu0 %v1363_v4, %s2873_s20  ;;  %v1364_v1 = vmul.f32 %v2751_v9, %v1354_v17 }
 0xf8d   :  { %v1356_v7 = vpop.permute.xlu0 %1355 }
 0xf8e   :  { %v1365_v60 = vmul.f32 %v2749_v2, %v1356_v7  ;;  %1373 = vrot.lane.b32.xlu1 %v1364_v1, %s2873_s20 }
 0xf8f   :  { %v1358_v18 = vpop.permute.xlu1 %1357 }
 0xf90   :  { %1375 = vrot.lane.b32.xlu0 %v1365_v60, %s2873_s20  ;;  %v1366_v14 = vmul.f32 %v2753_v12, %v1358_v18 }
 0xf92   :  { %1377 = vrot.lane.b32.xlu1 %v1366_v14, %s2873_s20 }
 0xffe   :  { %v1372_v19 = vpop.permute.xlu0 %1371  ;;  %v2341_v45 = vpop.f32.mrb[4].mxu1 }
 0xfff   :  { %v3192_v20 = vadd.f32 %v1372_v19, %v1343_v11  ;;  %v341_v46 = vpop.f32.mrb[5].mxu1  ;;  %v350_v48 = vadd.f32 %v3179_v38, %v2341_v45 }
0x1000   :  { %v1374_v25 = vpop.permute.xlu1 %1373  ;;  %v2342_v47 = vpop.f32.mrb[6].mxu1  ;;  %v342_v49 = vadd.f32 %v3179_v38, %v341_v46 }
0x1001   :  { %2754 = vtanh.f32 %v3192_v20  ;;  %v3199_v26 = vadd.f32 %v1374_v25, %v1344_v23  ;;  %v344_v15 = vpop.f32.mrb[7].mxu1  ;;  %v353_v51 = vadd.f32 %v3179_v38, %v2342_v47 }
0x1002   :  { %v1376_v22 = vpop.permute.xlu0 %1375  ;;  %v345_v55 = vadd.f32 %v3179_v38, %v344_v15 }
0x1003   :  { %v3197_v24 = vadd.f32 %v1376_v22, %v1345_v21 }
0x1004   :  { %v1378_v27 = vpop.permute.xlu1 %1377 }
0x1005   :  { %2756 = vtanh.f32 %v3197_v24  ;;  %v3204_v28 = vadd.f32 %v1378_v27, %v1346_v10 }
0x1006   :  { %2758 = vtanh.f32 %v3199_v26 }
0x1007   :  { %2760 = vtanh.f32 %v3204_v28 }
0x100b   :  { %v2755_v29 = vpop.eup %2754 }
0x100c   :  { %1395 = vrot.lane.b32.xlu0 %v2755_v29, %s2873_s20 }
0x100f   :  { %v2757_v57 = vpop.eup %2756 }
0x1010   :  { %1399 = vrot.lane.b32.xlu0 %v2757_v57, %s2873_s20  ;;  %v2759_v30 = vpop.eup %2758 }
0x1011   :  { %1397 = vrot.lane.b32.xlu1 %v2759_v30, %s2873_s20  ;;  %v2761_v16 = vpop.eup %2760 }
0x1015   :  { %1401 = vrot.lane.b32.xlu1 %v2761_v16, %s2873_s20 }
0x107e   :  { %v1396_v34 = vpop.permute.xlu0 %1395 }
0x107f   :  { %v1407_v36 = vmul.f32 %v2747_v59, %v1396_v34 }
0x1082   :  { %v1400_v6 = vpop.permute.xlu0 %1399 }
0x1083   :  { %v1398_v35 = vpop.permute.xlu1 %1397  ;;  %v1409_v40 = vmul.f32 %v2749_v2, %v1400_v6 }
0x1084   :  { %v1408_v3 = vmul.f32 %v2751_v9, %v1398_v35 }
0x1086   :  { %v1415_v37 = vpack.c.bf16 %v1408_v3, %v1407_v36 }
0x1087   :  { %v1402_v39 = vpop.permute.xlu1 %1401 }
0x1088   :  { %v1410_v41 = vmul.f32 %v2753_v12, %v1402_v39  ;;  %1419 = vrot.lane.b32.xlu0 %v1415_v37, %s2870_s22 }
0x108a   :  { %v1416_v42 = vpack.c.bf16 %v1410_v41, %v1409_v40 }
0x108c   :  { %1421 = vrot.lane.b32.xlu1 %v1416_v42, %s2870_s22 }
0x10fa   :  { %v1420_v43 = vpop.permute.xlu0 %1419 }
0x10fb   :  { %2399 = vmatprep.mubr.msk.bf16.mxu0 %vm162_vm0, %v1420_v43  ;;  %v2551_v43 = vld [vmem:[%s3327_s0 + $0x78] sm:$0xff]  }
0x10fe   :  { %v1422_v44 = vpop.permute.xlu1 %1421 }
0x10ff   :  { %2400 = vmatmul.mubr.msk.bf16.vlgmr.msra.gmra.mrb[24].mxu0 %vm162_vm0, %v1422_v44 }
0x1100   :  { %2404 = vmatpush3.bf16.msra.mxu0 %v3166_v31 }
0x1101   :  { %2405 = vmatprep.subr.bf16.mxu0 %v3169_v32 }
0x1104   :  { %2406 = vmatpush3.bf16.msra.mxu0 %v3169_v32 }
0x11d2   :  { %v2401_v50 = vpop.f32.mrb[24].mxu0 }
0x11d3   :  { %v1480_v52 = vadd.f32 %v2401_v50, %v350_v48  ;;  %v1463_v53 = vpop.f32.mrb[25].mxu0 }
0x11d4   :  { %v1478_v31 = vadd.f32 %v1463_v53, %v342_v49  ;;  %v2402_v56 = vpop.f32.mrb[26].mxu0 }
0x11d5   :  { %v1481_v58 = vadd.f32 %v2402_v56, %v353_v51  ;;  %v1466_v61 = vpop.f32.mrb[27].mxu0  ;;  %v2206_v59 = vmul.f32 -1.442695, %v1480_v52 }
0x11d6   :  { %2762 = vtanh.f32 %v1478_v31  ;;  %v1479_v32 = vadd.f32 %v1466_v61, %v345_v55  ;;  %v2204_v8 = vmul.f32 -1.442695, %v1478_v31 }
0x11d7   :  { %2764 = vtanh.f32 %v1480_v52  ;;  %v2207_v4 = vmul.f32 -1.442695, %v1481_v58 }
0x11d8   :  { %2766 = vtanh.f32 %v1479_v32  ;;  %v2205_v63 = vmul.f32 -1.442695, %v1479_v32 }
0x11d9   :  { %2768 = vtanh.f32 %v1481_v58 }
0x11da   :  { %2770 = vpow2.f32 %v2204_v8 }
0x11db   :  { %2772 = vpow2.f32 %v2206_v59 }
0x11dc   :  { %2774 = vpow2.f32 %v2205_v63 }
0x11dd   :  { %2776 = vpow2.f32 %v2207_v4 }
0x11e0   :  { %v2763_v62 = vpop.eup %2762 }
0x11e1   :  { %1518 = vrot.lane.b32.xlu0 %v2763_v62, %s2873_s20  ;;  %v2765_v0 = vpop.eup %2764 }
0x11e2   :  { %v2767_v54 = vpop.eup %2766 }
0x11e3   :  { %1520 = vrot.lane.b32.xlu1 %v2767_v54, %s2873_s20  ;;  %v2769_v5 = vpop.eup %2768 }
0x11e4   :  { %v2771_v2 = vpop.eup %2770 }
0x11e5   :  { %1522 = vrot.lane.b32.xlu0 %v2765_v0, %s2873_s20  ;;  %v1494_v7 = vadd.f32 1.0, %v2771_v2  ;;  %v2773_v60 = vpop.eup %2772 }
0x11e6   :  { %v2775_v9 = vpop.eup %2774  ;;  %v1496_v17 = vadd.f32 1.0, %v2773_v60 }
0x11e7   :  { %1524 = vrot.lane.b32.xlu1 %v2769_v5, %s2873_s20  ;;  %2778 = vrcp.f32 %v1494_v7  ;;  %v1495_v1 = vadd.f32 1.0, %v2775_v9  ;;  %v2777_v12 = vpop.eup %2776 }
0x11e8   :  { %2780 = vrcp.f32 %v1496_v17  ;;  %v1497_v18 = vadd.f32 1.0, %v2777_v12 }
0x11e9   :  { %2782 = vrcp.f32 %v1495_v1 }
0x11ea   :  { %2784 = vrcp.f32 %v1497_v18 }
0x11f1   :  { %v2779_v14 = vpop.eup %2778 }
0x11f2   :  { %v2781_v21 = vpop.eup %2780  ;;  %v1510_v30 = vmul.f32 %v2779_v14, %v3192_v20 }
0x11f3   :  { %v2783_v25 = vpop.eup %2782  ;;  %v1512_v34 = vmul.f32 %v2781_v21, %v3197_v24  ;;  %v2550_v24 = vld [vmem:[%s3327_s0 + $0x70] sm:$0xff]  }
0x11f4   :  { %v2785_v29 = vpop.eup %2784  ;;  %v1511_v36 = vmul.f32 %v2783_v25, %v3199_v26  ;;  %2343 = vmatprep.mubr.msk.bf16.mxu1 %vm162_vm0, %v2550_v24 }
0x11f5   :  { %v1513_v20 = vmul.f32 %v2785_v29, %v3204_v28  ;;  %2344 = vmatmul.mubr.msk.bf16.gmra.mrb[8].mxu1 %vm162_vm0, %v2551_v43 }
0x1253   :  { %v1519_v11 = vpop.permute.xlu0 %1518 }
0x1254   :  { %v1530_v19 = vmul.f32 %v2779_v14, %v1519_v11 }
0x1255   :  { %v1521_v10 = vpop.permute.xlu1 %1520 }
0x1256   :  { %1538 = vrot.lane.b32.xlu0 %v1530_v19, %s2873_s20  ;;  %v1531_v27 = vmul.f32 %v2783_v25, %v1521_v10 }
0x1257   :  { %v1523_v22 = vpop.permute.xlu0 %1522 }
0x1258   :  { %v1532_v23 = vmul.f32 %v2781_v21, %v1523_v22  ;;  %1540 = vrot.lane.b32.xlu1 %v1531_v27, %s2873_s20 }
0x1259   :  { %v1525_v13 = vpop.permute.xlu1 %1524 }
0x125a   :  { %1542 = vrot.lane.b32.xlu0 %v1532_v23, %s2873_s20  ;;  %v1533_v57 = vmul.f32 %v2785_v29, %v1525_v13 }
0x125c   :  { %1544 = vrot.lane.b32.xlu1 %v1533_v57, %s2873_s20 }
0x12c8   :  { %v1539_v16 = vpop.permute.xlu0 %1538  ;;  %v2345_v31 = vpop.f32.mrb[8].mxu1 }
0x12c9   :  { %v3239_v33 = vadd.f32 %v1539_v16, %v1510_v30  ;;  %v357_v56 = vpop.f32.mrb[9].mxu1  ;;  %v366_v32 = vadd.f32 %v3179_v38, %v2345_v31 }
0x12ca   :  { %v1541_v6 = vpop.permute.xlu1 %1540  ;;  %v2346_v58 = vpop.f32.mrb[10].mxu1  ;;  %v358_v62 = vadd.f32 %v3179_v38, %v357_v56 }
0x12cb   :  { %2786 = vtanh.f32 %v3239_v33  ;;  %v3246_v37 = vadd.f32 %v1541_v6, %v1511_v36  ;;  %v360_v61 = vpop.f32.mrb[11].mxu1  ;;  %v369_v54 = vadd.f32 %v3179_v38, %v2346_v58 }
0x12cc   :  { %v1543_v35 = vpop.permute.xlu0 %1542  ;;  %v361_v59 = vadd.f32 %v3179_v38, %v360_v61 }
0x12cd   :  { %v3244_v3 = vadd.f32 %v1543_v35, %v1512_v34 }
0x12ce   :  { %v1545_v39 = vpop.permute.xlu1 %1544 }
0x12cf   :  { %2788 = vtanh.f32 %v3244_v3  ;;  %v3251_v40 = vadd.f32 %v1545_v39, %v1513_v20 }
0x12d0   :  { %2790 = vtanh.f32 %v3246_v37 }
0x12d1   :  { %2792 = vtanh.f32 %v3251_v40 }
0x12d5   :  { %v2787_v41 = vpop.eup %2786 }
0x12d6   :  { %1562 = vrot.lane.b32.xlu0 %v2787_v41, %s2873_s20 }
0x12d9   :  { %v2789_v26 = vpop.eup %2788 }
0x12da   :  { %1566 = vrot.lane.b32.xlu0 %v2789_v26, %s2873_s20  ;;  %v2791_v42 = vpop.eup %2790 }
0x12db   :  { %1564 = vrot.lane.b32.xlu1 %v2791_v42, %s2873_s20  ;;  %v2793_v28 = vpop.eup %2792 }
0x12df   :  { %1568 = vrot.lane.b32.xlu1 %v2793_v28, %s2873_s20 }
0x1348   :  { %v1563_v44 = vpop.permute.xlu0 %1562 }
0x1349   :  { %v1574_v46 = vmul.f32 %v2779_v14, %v1563_v44 }
0x134c   :  { %v1567_v15 = vpop.permute.xlu0 %1566 }
0x134d   :  { %v1565_v45 = vpop.permute.xlu1 %1564  ;;  %v1576_v50 = vmul.f32 %v2781_v21, %v1567_v15 }
0x134e   :  { %v1575_v47 = vmul.f32 %v2783_v25, %v1565_v45 }
0x1350   :  { %v1582_v48 = vpack.c.bf16 %v1575_v47, %v1574_v46 }
0x1351   :  { %v1569_v49 = vpop.permute.xlu1 %1568 }
0x1352   :  { %v1577_v51 = vmul.f32 %v2785_v29, %v1569_v49  ;;  %1586 = vrot.lane.b32.xlu0 %v1582_v48, %s2870_s22 }
0x1354   :  { %v1583_v52 = vpack.c.bf16 %v1577_v51, %v1576_v50 }
0x1356   :  { %1588 = vrot.lane.b32.xlu1 %v1583_v52, %s2870_s22  ;;  %v2553_v52 = vld [vmem:[#allocation3 + $0x28] sm:$0xff]  }
0x13c4   :  { %v1587_v53 = vpop.permute.xlu0 %1586 }
0x13c5   :  { %2407 = vmatprep.mubr.msk.bf16.mxu0 %vm162_vm0, %v1587_v53 }
0x13c8   :  { %v1589_v55 = vpop.permute.xlu1 %1588 }
0x13c9   :  { %2408 = vmatmul.mubr.msk.bf16.vlgmr.msra.gmra.mrb[28].mxu0 %vm162_vm0, %v1589_v55  ;;  %v2554_v55 = vld [vmem:[#allocation3 + $0x30] sm:$0xff]  }
0x149c   :  { %v2409_v0 = vpop.f32.mrb[28].mxu0 }
0x149d   :  { %v1647_v5 = vadd.f32 %v2409_v0, %v366_v32  ;;  %v1630_v8 = vpop.f32.mrb[29].mxu0 }
0x149e   :  { %v1645_v63 = vadd.f32 %v1630_v8, %v358_v62  ;;  %v2410_v4 = vpop.f32.mrb[30].mxu0 }
0x149f   :  { %v1648_v2 = vadd.f32 %v2410_v4, %v369_v54  ;;  %v1633_v7 = vpop.f32.mrb[31].mxu0  ;;  %v2212_v18 = vmul.f32 -1.442695, %v1647_v5  ;;  %v2556_v4 = vld [vmem:[#allocation3 + $0x40] sm:$0xff]  }
0x14a0   :  { %2794 = vtanh.f32 %v1645_v63  ;;  %v1646_v60 = vadd.f32 %v1633_v7, %v361_v59  ;;  %v2210_v38 = vmul.f32 -1.442695, %v1645_v63  ;;  %v2555_v59 = vld [vmem:[#allocation3 + $0x38] sm:$0xff]   ;;  %v2558_v7 = vld [vmem:[#allocation3 + $0x50] sm:$0xff]  }
0x14a1   :  { %2796 = vtanh.f32 %v1647_v5  ;;  %v2213_v11 = vmul.f32 -1.442695, %v1648_v2 }
0x14a2   :  { %2798 = vtanh.f32 %v1646_v60  ;;  %v2211_v14 = vmul.f32 -1.442695, %v1646_v60  ;;  %v2559_v60 = vld [vmem:[#allocation3 + $0x58] sm:$0xff]  }
0x14a3   :  { %2800 = vtanh.f32 %v1648_v2  ;;  %v2557_v2 = vld [vmem:[#allocation3 + $0x48] sm:$0xff]  }
0x14a4   :  { %2802 = vpow2.f32 %v2210_v38 }
0x14a5   :  { %2804 = vpow2.f32 %v2212_v18 }
0x14a6   :  { %2806 = vpow2.f32 %v2211_v14 }
0x14a7   :  { %2808 = vpow2.f32 %v2213_v11 }
0x14aa   :  { %v2795_v9 = vpop.eup %2794 }
0x14ab   :  { %1685 = vrot.lane.b32.xlu0 %v2795_v9, %s2873_s20  ;;  %v2797_v17 = vpop.eup %2796  ;;  %v2560_v9 = vld [vmem:[#allocation3 + $0x60] sm:$0xff]  }
0x14ac   :  { %v2799_v1 = vpop.eup %2798 }
0x14ad   :  { %1687 = vrot.lane.b32.xlu1 %v2799_v1, %s2873_s20  ;;  %v2801_v12 = vpop.eup %2800  ;;  %v2562_v1 = vld [vmem:[#allocation3 + $0x70] sm:$0xff]  }
0x14ae   :  { %v2803_v19 = vpop.eup %2802 }
0x14af   :  { %1689 = vrot.lane.b32.xlu0 %v2797_v17, %s2873_s20  ;;  %v1661_v21 = vadd.f32 1.0, %v2803_v19  ;;  %v2805_v22 = vpop.eup %2804  ;;  %v2561_v17 = vld [vmem:[#allocation3 + $0x68] sm:$0xff]  }
0x14b0   :  { %v2807_v23 = vpop.eup %2806  ;;  %v1663_v25 = vadd.f32 1.0, %v2805_v22 }
0x14b1   :  { %1691 = vrot.lane.b32.xlu1 %v2801_v12, %s2873_s20  ;;  %2810 = vrcp.f32 %v1661_v21  ;;  %v1662_v10 = vadd.f32 1.0, %v2807_v23  ;;  %v2809_v27 = vpop.eup %2808  ;;  %v2214_v12 = vld [vmem:[%s3329_s2 + $0x8] ss:$0 sm:$0xff] }
0x14b2   :  { %2812 = vrcp.f32 %v1663_v25  ;;  %v1664_v29 = vadd.f32 1.0, %v2809_v27 }
0x14b3   :  { %2814 = vrcp.f32 %v1662_v10 }
0x14b4   :  { %2816 = vrcp.f32 %v1664_v29 }
0x14bb   :  { %v2811_v13 = vpop.eup %2810 }
0x14bc   :  { %v2813_v16 = vpop.eup %2812  ;;  %v1677_v26 = vmul.f32 %v2811_v13, %v3239_v33  ;;  %v2552_v33 = vld [vmem:[#allocation3 + $0x20] sm:$0xff]  }
0x14bd   :  { %v2815_v36 = vpop.eup %2814  ;;  %v1679_v43 = vmul.f32 %v2813_v16, %v3244_v3  ;;  %2411 = vmatprep.subr.bf16.mxu1 %v2552_v33 }
0x14be   :  { %v2817_v39 = vpop.eup %2816  ;;  %v1678_v45 = vmul.f32 %v2815_v36, %v3246_v37  ;;  %2412 = vmatpush3.bf16.msra.mxu1 %v2552_v33 }
0x14bf   :  { %v1680_v48 = vmul.f32 %v2817_v39, %v3251_v40  ;;  %2413 = vmatprep.subr.bf16.mxu1 %v2553_v52 }
0x14c2   :  { %2414 = vmatpush3.bf16.msra.mxu1 %v2553_v52 }
0x14c3   :  { %2419 = vmatprep.subr.bf16.mxu1 %v2554_v55 }
0x151d   :  { %v1686_v57 = vpop.permute.xlu0 %1685 }
0x151e   :  { %v1697_v30 = vmul.f32 %v2811_v13, %v1686_v57 }
0x151f   :  { %v1688_v6 = vpop.permute.xlu1 %1687 }
0x1520   :  { %1705 = vrot.lane.b32.xlu0 %v1697_v30, %s2873_s20  ;;  %v1698_v20 = vmul.f32 %v2815_v36, %v1688_v6  ;;  %v2563_v30 = vld [vmem:[#allocation3 + $0x78] sm:$0xff]   ;;  %v2568_v6 = vld [vmem:[#allocation3 + $0xa0] sm:$0xff]  }
0x1521   :  { %v1690_v34 = vpop.permute.xlu0 %1689 }
0x1522   :  { %v1699_v35 = vmul.f32 %v2813_v16, %v1690_v34  ;;  %1707 = vrot.lane.b32.xlu1 %v1698_v20, %s2873_s20  ;;  %v2565_v34 = vld [vmem:[#allocation3 + $0x88] sm:$0xff]  }
0x1523   :  { %v1692_v41 = vpop.permute.xlu1 %1691  ;;  %v2569_v20 = vld [vmem:[#allocation3 + $0xa8] sm:$0xff]  }
0x1524   :  { %1709 = vrot.lane.b32.xlu0 %v1699_v35, %s2873_s20  ;;  %v1700_v24 = vmul.f32 %v2817_v39, %v1692_v41  ;;  %v2566_v35 = vld [vmem:[#allocation3 + $0x90] sm:$0xff]  }
0x1526   :  { %1711 = vrot.lane.b32.xlu1 %v1700_v24, %s2873_s20 }
0x1592   :  { %v1706_v42 = vpop.permute.xlu0 %1705 }
0x1593   :  { %v1717_v28 = vadd.f32 %v1706_v42, %v1677_v26 }
0x1594   :  { %v1708_v47 = vpop.permute.xlu1 %1707 }
0x1595   :  { %2818 = vtanh.f32 %v1717_v28  ;;  %v1718_v15 = vadd.f32 %v1708_v47, %v1678_v45 }
0x1596   :  { %v1710_v44 = vpop.permute.xlu0 %1709 }
0x1597   :  { %v1719_v46 = vadd.f32 %v1710_v44, %v1679_v43 }
0x1598   :  { %v1712_v49 = vpop.permute.xlu1 %1711 }
0x1599   :  { %2820 = vtanh.f32 %v1719_v46  ;;  %v1720_v50 = vadd.f32 %v1712_v49, %v1680_v48 }
0x159a   :  { %2822 = vtanh.f32 %v1718_v15 }
0x159b   :  { %2824 = vtanh.f32 %v1720_v50 }
0x159f   :  { %v2819_v51 = vpop.eup %2818 }
0x15a0   :  { %1729 = vrot.lane.b32.xlu0 %v2819_v51, %s2873_s20  ;;  %v2228_v51 = vld [vmem:[%s3329_s2 + $0x18] ss:$0 sm:$0xff] }
0x15a3   :  { %v2821_v53 = vpop.eup %2820 }
0x15a4   :  { %1733 = vrot.lane.b32.xlu0 %v2821_v53, %s2873_s20  ;;  %v2823_v3 = vpop.eup %2822 }
0x15a5   :  { %1731 = vrot.lane.b32.xlu1 %v2823_v3, %s2873_s20  ;;  %v2825_v37 = vpop.eup %2824 }
0x15a9   :  { %1735 = vrot.lane.b32.xlu1 %v2825_v37, %s2873_s20 }
0x1612   :  { %v1730_v40 = vpop.permute.xlu0 %1729 }
0x1613   :  { %v1741_v56 = vmul.f32 %v2811_v13, %v1730_v40 }
0x1616   :  { %v1734_v61 = vpop.permute.xlu0 %1733 }
0x1617   :  { %v1732_v31 = vpop.permute.xlu1 %1731  ;;  %v1743_v0 = vmul.f32 %v2813_v16, %v1734_v61  ;;  %v2564_v16 = vld [vmem:[#allocation3 + $0x80] sm:$0xff]  }
0x1618   :  { %v1742_v58 = vmul.f32 %v2815_v36, %v1732_v31  ;;  %v2567_v36 = vld [vmem:[#allocation3 + $0x98] sm:$0xff]  }
0x161a   :  { %v1745_v32 = vpack.c.bf16 %v1742_v58, %v1741_v56 }
0x161b   :  { %v1736_v62 = vpop.permute.xlu1 %1735 }
0x161c   :  { %v1744_v54 = vmul.f32 %v2817_v39, %v1736_v62  ;;  %1758 = vrot.lane.b32.xlu0 %v1745_v32, %s2870_s22  ;;  %v2219_v39 = vld [vmem:[%s3329_s2 + $0x10] ss:$0 sm:$0xff] }
0x161e   :  { %v1746_v5 = vpack.c.bf16 %v1744_v54, %v1743_v0 }
0x1620   :  { %1760 = vrot.lane.b32.xlu1 %v1746_v5, %s2870_s22 }
0x168e   :  { %v1759_v8 = vpop.permute.xlu0 %1758 }
0x168f   :  { %2415 = vmatprep.mubr.msk.bf16.mxu1 %vm162_vm0, %v1759_v8 }
0x1692   :  { %v1761_v63 = vpop.permute.xlu1 %1760 }
0x1693   :  { %2416 = vmatmul.mubr.msk.bf16.vlgmr.msra.gmra.mrb[12].mxu1 %vm162_vm0, %v1761_v63 }
0x1694   :  { %2420 = vmatpush3.bf16.msra.mxu1 %v2554_v55 }
0x1695   :  { %2421 = vmatprep.subr.bf16.mxu1 %v2555_v59 }
0x1698   :  { %2422 = vmatpush3.bf16.msra.mxu1 %v2555_v59 }
0x1699   :  { %2423 = vmatprep.subr.bf16.mxu1 %v2556_v4 }
0x169c   :  { %2424 = vmatpush3.bf16.msra.mxu1 %v2556_v4 }
0x169d   :  { %2425 = vmatprep.subr.bf16.mxu1 %v2557_v2 }
0x16a0   :  { %2426 = vmatpush3.bf16.msra.mxu1 %v2557_v2 }
0x16a1   :  { %2427 = vmatprep.subr.bf16.mxu1 %v2558_v7 }
0x16a4   :  { %2428 = vmatpush3.bf16.msra.mxu1 %v2558_v7 }
0x16a5   :  { %2429 = vmatprep.subr.bf16.mxu1 %v2559_v60 }
0x16a8   :  { %2430 = vmatpush3.bf16.msra.mxu1 %v2559_v60 }
0x16a9   :  { %2431 = vmatprep.subr.bf16.mxu1 %v2560_v9 }
0x16ac   :  { %2432 = vmatpush3.bf16.msra.mxu1 %v2560_v9 }
0x16ad   :  { %2433 = vmatprep.subr.bf16.mxu1 %v2561_v17 }
0x16b0   :  { %2434 = vmatpush3.bf16.msra.mxu1 %v2561_v17 }
0x16b1   :  { %2439 = vmatprep.subr.bf16.mxu1 %v2562_v1 }
0x1766   :  { %v2417_v38 = vpop.f32.mrb[12].mxu1 }
0x1767   :  { %v1823_v18 = vadd.f32 %v2417_v38, %v2214_v12  ;;  %v1814_v14 = vpop.f32.mrb[13].mxu1 }
0x1768   :  { %v1815_v11 = vadd.f32 %v2214_v12, %v1814_v14  ;;  %v2418_v19 = vpop.f32.mrb[14].mxu1 }
0x1769   :  { %v1826_v21 = vadd.f32 %v2418_v19, %v2214_v12  ;;  %v1817_v22 = vpop.f32.mrb[15].mxu1  ;;  %v1831_v25 = vmax.f32 %v1823_v18, 0.0 }
0x176a   :  { %v1818_v23 = vadd.f32 %v2214_v12, %v1817_v22  ;;  %v1829_v27 = vmax.f32 %v1815_v11, 0.0 }
0x176b   :  { %v1832_v10 = vmax.f32 %v1826_v21, 0.0 }
0x176c   :  { %v1830_v29 = vmax.f32 %v1818_v23, 0.0 }
0x176d   :  { %v1834_v13 = vpack.c.bf16 %v1832_v10, %v1831_v25 }
0x176e   :  { %v1833_v57 = vpack.c.bf16 %v1830_v29, %v1829_v27 }
0x1770   :  { %2435 = vmatprep.mubr.bf16.mxu1 %v1833_v57 }
0x1771   :  { %2436 = vmatmul.mubr.bf16.vlgmr.msra.gmra.mrb[16].mxu1 %v1834_v13 }
0x1772   :  { %2440 = vmatpush3.bf16.msra.mxu1 %v2562_v1 }
0x1773   :  { %2441 = vmatprep.subr.bf16.mxu1 %v2563_v30 }
0x1776   :  { %2442 = vmatpush3.bf16.msra.mxu1 %v2563_v30 }
0x1777   :  { %2443 = vmatprep.subr.bf16.mxu1 %v2564_v16 }
0x177a   :  { %2444 = vmatpush3.bf16.msra.mxu1 %v2564_v16 }
0x177b   :  { %2445 = vmatprep.subr.bf16.mxu1 %v2565_v34 }
0x177e   :  { %2446 = vmatpush3.bf16.msra.mxu1 %v2565_v34 }
0x177f   :  { %2447 = vmatprep.subr.bf16.mxu1 %v2566_v35 }
0x1782   :  { %2448 = vmatpush3.bf16.msra.mxu1 %v2566_v35 }
0x1783   :  { %2449 = vmatprep.subr.bf16.mxu1 %v2567_v36 }
0x1786   :  { %2450 = vmatpush3.bf16.msra.mxu1 %v2567_v36 }
0x1787   :  { %2451 = vmatprep.subr.bf16.mxu1 %v2568_v6 }
0x178a   :  { %2452 = vmatpush3.bf16.msra.mxu1 %v2568_v6 }
0x178b   :  { %2453 = vmatprep.subr.bf16.mxu1 %v2569_v20 }
0x178e   :  { %2454 = vmatpush3.bf16.msra.mxu1 %v2569_v20 }
0x1844   :  { %v2437_v41 = vpop.f32.mrb[16].mxu1 }
0x1845   :  { %v1947_v24 = vadd.f32 %v2437_v41, %v2219_v39  ;;  %v1938_v26 = vpop.f32.mrb[17].mxu1 }
0x1846   :  { %v1939_v42 = vadd.f32 %v2219_v39, %v1938_v26  ;;  %v2438_v28 = vpop.f32.mrb[18].mxu1 }
0x1847   :  { %v1950_v43 = vadd.f32 %v2438_v28, %v2219_v39  ;;  %v1941_v44 = vpop.f32.mrb[19].mxu1  ;;  %v1955_v46 = vmax.f32 %v1947_v24, 0.0 }
0x1848   :  { %v1942_v45 = vadd.f32 %v2219_v39, %v1941_v44  ;;  %v1953_v15 = vmax.f32 %v1939_v42, 0.0 }
0x1849   :  { %v1956_v47 = vmax.f32 %v1950_v43, 0.0 }
0x184a   :  { %v1954_v48 = vmax.f32 %v1942_v45, 0.0 }
0x184b   :  { %v1958_v49 = vpack.c.bf16 %v1956_v47, %v1955_v46 }
0x184c   :  { %v1957_v50 = vpack.c.bf16 %v1954_v48, %v1953_v15 }
0x184e   :  { %2455 = vmatprep.mubr.bf16.mxu1 %v1957_v50 }
0x184f   :  { %2456 = vmatmul.mubr.bf16.vlgmr.msra.gmra.mrb[20].mxu1 %v1958_v49 }
0x1922   :  { %v2457_v33 = vpop.f32.mrb[20].mxu1 }
0x1923   :  { %v2062_v52 = vpop.f32.mrb[21].mxu1  ;;  %v2071_v40 = vadd.f32 %v2457_v33, %v2228_v51 }
0x1924   :  { %v2063_v53 = vadd.f32 %v2228_v51, %v2062_v52  ;;  %v2458_v3 = vpop.f32.mrb[22].mxu1 }
0x1925   :  { %v2065_v37 = vpop.f32.mrb[23].mxu1  ;;  %v2074_v58 = vadd.f32 %v2458_v3, %v2228_v51  ;;  %v2084_v61 = vsel %vm2077_vm1, %v2071_v40, -inf }
0x1926   :  { %v2066_v55 = vadd.f32 %v2228_v51, %v2065_v37  ;;  %v2078_v31 = vsel %vm2077_vm1, %v2063_v53, -inf }
0x1927   :  { %2079 = vmax.xlane.f32.xlu0 %v2078_v31  ;;  %v2087_v32 = vsel %vm2077_vm1, %v2074_v58, -inf }
0x1928   :  { %v2081_v56 = vsel %vm2077_vm1, %v2066_v55, -inf }
0x1929   :  { %2082 = vmax.xlane.f32.xlu1 %v2081_v56 }
0x192b   :  { %2085 = vmax.xlane.f32.xlu0 %v2084_v61 }
0x192f   :  { %2088 = vmax.xlane.f32.xlu0 %v2087_v32 }
0x19b4   :  { %v2080_v62 = vpop.xlane.xlu0 %2079 }
0x19b5   :  { %v2090_v0 = vsub.f32 %v2063_v53, %v2080_v62 }
0x19b6   :  { %v2083_v54 = vpop.xlane.xlu1 %2082 }
0x19b7   :  { %v2094_v5 = vmul.f32 1.442695, %v2090_v0  ;;  %v2091_v8 = vsub.f32 %v2066_v55, %v2083_v54 }
0x19b8   :  { %v2086_v59 = vpop.xlane.xlu0 %2085 }
0x19b9   :  { %2826 = vpow2.f32 %v2094_v5  ;;  %v2096_v63 = vmul.f32 1.442695, %v2091_v8  ;;  %v2092_v4 = vsub.f32 %v2071_v40, %v2086_v59 }
0x19bb   :  { %2828 = vpow2.f32 %v2096_v63  ;;  %v2098_v2 = vmul.f32 1.442695, %v2092_v4 }
0x19bc   :  { %v2089_v7 = vpop.xlane.xlu0 %2088 }
0x19bd   :  { %2830 = vpow2.f32 %v2098_v2  ;;  %v2093_v60 = vsub.f32 %v2074_v58, %v2089_v7 }
0x19bf   :  { %v2100_v9 = vmul.f32 1.442695, %v2093_v60 }
0x19c1   :  { %2832 = vpow2.f32 %v2100_v9 }
0x19c3   :  { %v2827_v17 = vpop.eup %2826 }
0x19c4   :  { %v2102_v1 = vsel %vm2077_vm1, %v2827_v17, 0.0 }
0x19c5   :  { %v2829_v12 = vpop.eup %2828  ;;  %2103 = vadd.xlane.f32.xlu1 %v2102_v1 }
0x19c6   :  { %v2105_v38 = vsel %vm2077_vm1, %v2829_v12, 0.0 }
0x19c7   :  { %v2831_v18 = vpop.eup %2830  ;;  %2106 = vadd.xlane.f32.xlu0 %v2105_v38 }
0x19c8   :  { %v2108_v14 = vsel %vm2077_vm1, %v2831_v18, 0.0 }
0x19c9   :  { %2109 = vadd.xlane.f32.xlu1 %v2108_v14 }
0x19cb   :  { %v2833_v11 = vpop.eup %2832 }
0x19cc   :  { %v2111_v19 = vsel %vm2077_vm1, %v2833_v11, 0.0 }
0x19cd   :  { %2112 = vadd.xlane.f32.xlu0 %v2111_v19 }
0x1a52   :  { %v2104_v21 = vpop.xlane.xlu1 %2103 }
0x1a53   :  { %2834 = vrcp.f32 %v2104_v21 }
0x1a54   :  { %v2107_v22 = vpop.xlane.xlu0 %2106 }
0x1a55   :  { %2836 = vrcp.f32 %v2107_v22 }
0x1a56   :  { %v2110_v23 = vpop.xlane.xlu1 %2109 }
0x1a57   :  { %2838 = vrcp.f32 %v2110_v23 }
0x1a5a   :  { %v2113_v25 = vpop.xlane.xlu0 %2112 }
0x1a5b   :  { %2840 = vrcp.f32 %v2113_v25 }
0x1a5d   :  { %v2835_v10 = vpop.eup %2834 }
0x1a5e   :  { %v2115_v27 = vmul.f32 %v2835_v10, %v2827_v17 }
0x1a5f   :  { %v2837_v29 = vpop.eup %2836 }
0x1a60   :  { %2122 = vst.msk [vmem:[%s3330_s3] sm:$0xff] %vm2077_vm1, %v2115_v27  ;;  %v2117_v13 = vmul.f32 %v2837_v29, %v2829_v12 }
0x1a61   :  { %v2839_v57 = vpop.eup %2838 }
0x1a62   :  { %2123 = vst.msk [vmem:[%s3330_s3 + $0x8] sm:$0xff] %vm2077_vm1, %v2117_v13  ;;  %v2119_v30 = vmul.f32 %v2839_v57, %v2831_v18 }
0x1a64   :  { %2124 = vst.msk [vmem:[%s3330_s3 + $0x10] sm:$0xff] %vm2077_vm1, %v2119_v30 }
0x1a65   :  { %v2841_v16 = vpop.eup %2840 }
0x1a66   :  { %v2121_v34 = vmul.f32 %v2841_v16, %v2833_v11 }
0x1a68   :  { %2125 = vst.msk [vmem:[%s3330_s3 + $0x18] sm:$0xff] %vm2077_vm1, %v2121_v34 }
0x1a69   :  { %2130 = vsyncpa [#allocation4], 1 }

</bundles_post_ra>
